<compile_context>
chip_gen: v7x
topology: tpu7x:2x2x1
jax: 0.10.0
libtpu: 0.0.40
codegen_flags: <defaults>
</compile_context>

<pallas_src>
import math

import numpy as np
import jax
import jax.numpy as jnp
from jax.experimental import pallas as pl
from jax.experimental.pallas import tpu as pltpu

# ---- small config consistent with Qwen2_5_VL_LM_Args -----------------------
DIM = 128
FFN_DIM = 256
N_HEADS = 4
N_KV_HEADS = 2
N_REP = N_HEADS // N_KV_HEADS
HEAD_DIM = DIM // N_HEADS               # 32
HALF = HEAD_DIM // 2                    # 16
MROPE_SECTION = [4, 6, 6]               # sums to HEAD_DIM // 2 == 16
NORM_EPS = 1e-6
ROPE_THETA = 10000.0
BATCH = 2
SEQ = 16

Q_OUT = N_HEADS * HEAD_DIM              # 128
KV_OUT = N_KV_HEADS * HEAD_DIM          # 64
QKV_OUT = Q_OUT + 2 * KV_OUT            # 256


# ---------------------------------------------------------------------------
# Fused decoder-layer kernel (single invocation, whole batch)
# ---------------------------------------------------------------------------
def _decoder_layer_kernel(x_ref, wqkv_ref, wo_ref, wgu_ref, wd_ref,
                          ln1_ref, ln2_ref, cos_ref, sin_ref, o_ref, attn_ref):
    f32 = jnp.float32
    bf16 = jnp.bfloat16

    x = x_ref[...].astype(f32)                                  # (B*S, D)

    # --- input RMSNorm -------------------------------------------------------
    var = jnp.mean(x * x, axis=-1, keepdims=True)
    hn = x * jax.lax.rsqrt(var + NORM_EPS) * ln1_ref[...].astype(f32)

    # --- packed Q|K|V projection (1/sqrt(head_dim) pre-folded into wq cols) --
    qkv = jnp.dot(hn.astype(bf16), wqkv_ref[...],
                  preferred_element_type=f32)                   # (B*S, 256)
    q = qkv[:, :Q_OUT]                                          # (B*S, 128)
    k = qkv[:, Q_OUT:Q_OUT + KV_OUT]                            # (B*S, 64)
    v = qkv[:, Q_OUT + KV_OUT:]                                 # (B*S, 64)

    # --- mrope RoPE, full-slab (head-tiled cos / sign-folded sin) ------------
    cos_q = cos_ref[...]                                        # (B*S, Q_OUT) f32
    sin_q = sin_ref[...]                                        # (B*S, Q_OUT) f32

    def half_swap(t, n_heads_local):
        # per 32-lane head group: [hi_half, lo_half]; sign lives in sin_q
        parts = []
        for h in range(n_heads_local):
            base = h * HEAD_DIM
            parts.append(t[:, base + HALF: base + HEAD_DIM])
            parts.append(t[:, base: base + HALF])
        return jnp.concatenate(parts, axis=-1)

    q_rot = (q * cos_q + half_swap(q, N_HEADS) * sin_q).astype(bf16)
    k_rot = (k * cos_q[:, :KV_OUT]
             + half_swap(k, N_KV_HEADS) * sin_q[:, :KV_OUT]).astype(bf16)
    v_bf = v.astype(bf16)

    # causal mask for the row-stacked (N_REP*S, S) score blocks
    row_q = jax.lax.broadcasted_iota(jnp.int32, (N_REP * SEQ, SEQ), 0) % SEQ
    col_k = jax.lax.broadcasted_iota(jnp.int32, (N_REP * SEQ, SEQ), 1)
    causal = col_k <= row_q
    neg_big = jnp.float32(-1e30)

    # --- causal attention, per (batch, kv-group); query heads merged ---------
    for b in range(BATCH):
        r0 = b * SEQ
        for g in range(N_KV_HEADS):
            kc0 = g * HEAD_DIM
            k_g = k_rot[r0:r0 + SEQ, kc0:kc0 + HEAD_DIM]        # (S, hd)
            v_g = v_bf[r0:r0 + SEQ, kc0:kc0 + HEAD_DIM]         # (S, hd)
            # stack the N_REP query heads of this group along rows
            q_stack = jnp.concatenate(
                [q_rot[r0:r0 + SEQ,
                       (g * N_REP + r) * HEAD_DIM:(g * N_REP + r + 1) * HEAD_DIM]
                 for r in range(N_REP)], axis=0)                # (N_REP*S, hd)

            s = jax.lax.dot_general(
                q_stack, k_g, (((1,), (1,)), ((), ())),
                preferred_element_type=f32)                     # (N_REP*S, S)
            s = jnp.where(causal, s, neg_big)
            m = jnp.max(s, axis=-1, keepdims=True)
            p = jnp.exp(s - m)
            denom = jnp.sum(p, axis=-1, keepdims=True)
            out = jnp.dot(p.astype(bf16), v_g, preferred_element_type=f32)
            out = out * pl.reciprocal(denom, approx=True)       # (N_REP*S, hd)

            # scatter each head's rows into the lane-dense attention slab
            for r in range(N_REP):
                h = g * N_REP + r
                attn_ref[r0:r0 + SEQ, h * HEAD_DIM:(h + 1) * HEAD_DIM] = \
                    out[r * SEQ:(r + 1) * SEQ, :]

    # --- o_proj + residual ----------------------------------------------------
    h1 = x + jnp.dot(attn_ref[...].astype(bf16), wo_ref[...],
                     preferred_element_type=f32)

    # --- post-attention RMSNorm -----------------------------------------------
    var2 = jnp.mean(h1 * h1, axis=-1, keepdims=True)
    hn2 = h1 * jax.lax.rsqrt(var2 + NORM_EPS) * ln2_ref[...].astype(f32)

    # --- SwiGLU MLP (packed gate|up) + residual --------------------------------
    gu = jnp.dot(hn2.astype(bf16), wgu_ref[...], preferred_element_type=f32)
    g_ = gu[:, :FFN_DIM]
    u_ = gu[:, FFN_DIM:]
    act = (g_ * jax.nn.sigmoid(g_)) * u_                        # SiLU(gate)*up, f32
    mlp_out = jnp.dot(act.astype(bf16), wd_ref[...], preferred_element_type=f32)

    o_ref[...] = (h1 + mlp_out).astype(o_ref.dtype)


# ---------------------------------------------------------------------------
# One-time parameter packing (NOT per forward call)
# ---------------------------------------------------------------------------
def pack_decoder_params(params):
    bf16 = jnp.bfloat16
    attn_scale = 1.0 / math.sqrt(HEAD_DIM)
    wqkv = jnp.concatenate(
        [params["wq"] * attn_scale, params["wk"], params["wv"]],
        axis=1).astype(bf16)                                    # (D, 256)
    wgu = jnp.concatenate([params["wg"], params["wu"]], axis=1).astype(bf16)
    return {
        "wqkv": wqkv,
        "wo": params["wo"].astype(bf16),
        "wgu": wgu,
        "wd": params["wd"].astype(bf16),
        "input_ln_w": params["input_ln_w"].astype(jnp.float32),
        "post_ln_w": params["post_ln_w"].astype(jnp.float32),
    }


# ---------------------------------------------------------------------------
# Glue (plain JAX): mrope section selection, rotary table construction
# ---------------------------------------------------------------------------
def select_mrope(cs, mrope_section):
    # cs: (3, B, S, head_dim) -> (B, S, head_dim)
    sec = list(mrope_section) * 2
    idx = np.cumsum(sec)[:-1]
    chunks = jnp.split(cs, idx, axis=-1)
    return jnp.concatenate([c[i % 3] for i, c in enumerate(chunks)], axis=-1)


def make_position_embeddings(b, s, hd, theta):
    inv_freq = 1.0 / (theta ** (jnp.arange(0, hd, 2, dtype=jnp.float32) / hd))
    pos = jnp.arange(s, dtype=jnp.float32)
    # three distinct position streams (temporal / height / width) to exercise mrope
    pos3 = jnp.stack([pos, pos // 2.0, pos % 4.0], axis=0)          # (3, S)
    pos3 = jnp.broadcast_to(pos3[:, None, :], (3, b, s))            # (3, B, S)
    freqs = pos3[..., None] * inv_freq[None, None, None, :]         # (3, B, S, hd/2)
    emb = jnp.concatenate([freqs, freqs], axis=-1)                  # (3, B, S, hd)
    return jnp.cos(emb), jnp.sin(emb)


# ---------------------------------------------------------------------------
# Decoder layer forward (fused Pallas path)
# ---------------------------------------------------------------------------
def decoder_layer_forward(packed, hidden_states, position_embeddings):
    cos3, sin3 = position_embeddings
    b, s, d = hidden_states.shape
    bs = b * s

    # mrope section merge + sign-folded sin, tiled to full q lane width
    cos = select_mrope(cos3, MROPE_SECTION)                     # (B, S, head_dim)
    sin = select_mrope(sin3, MROPE_SECTION)
    sign = jnp.concatenate([-jnp.ones((HALF,), jnp.float32),
                            jnp.ones((HALF,), jnp.float32)])
    sin_signed = sin * sign
    cos_q = jnp.tile(cos, (1, 1, N_HEADS)).reshape(bs, Q_OUT)   # (B*S, 128)
    sin_q = jnp.tile(sin_signed, (1, 1, N_HEADS)).reshape(bs, Q_OUT)

    x2d = hidden_states.reshape(bs, d)

    out2d = pl.pallas_call(
        _decoder_layer_kernel,
        out_shape=jax.ShapeDtypeStruct((bs, d), hidden_states.dtype),
        scratch_shapes=[pltpu.VMEM((bs, Q_OUT), jnp.float32)],  # attention slab
    )(x2d, packed["wqkv"], packed["wo"], packed["wgu"], packed["wd"],
      packed["input_ln_w"], packed["post_ln_w"], cos_q, sin_q)

    return out2d.reshape(b, s, d)


# ---------------------------------------------------------------------------
# Pure-JAX reference (mirrors the PyTorch module) for validation
# ---------------------------------------------------------------------------
def reference_forward(params, hidden_states, position_embeddings):
    cos3, sin3 = position_embeddings
    b, s, d = hidden_states.shape

    def rmsnorm_ref(t, w):
        var = jnp.mean(t.astype(jnp.float32) ** 2, axis=-1, keepdims=True)
        return t * jax.lax.rsqrt(var + NORM_EPS) * w.reshape(-1)

    def rotate_half_ref(t):
        h = t.shape[-1] // 2
        return jnp.concatenate([-t[..., h:], t[..., :h]], axis=-1)

    x = hidden_states
    hn = rmsnorm_ref(x, params["input_ln_w"])
    q = (hn.reshape(b * s, d) @ params["wq"]).reshape(b, s, N_HEADS, HEAD_DIM)
    k = (hn.reshape(b * s, d) @ params["wk"]).reshape(b, s, N_KV_HEADS, HEAD_DIM)
    v = (hn.reshape(b * s, d) @ params["wv"]).reshape(b, s, N_KV_HEADS, HEAD_DIM)

    cos = select_mrope(cos3, MROPE_SECTION)[:, :, None, :]   # unsqueeze_dim=2
    sin = select_mrope(sin3, MROPE_SECTION)[:, :, None, :]
    q = q * cos + rotate_half_ref(q) * sin
    k = k * cos + rotate_half_ref(k) * sin

    n_rep = N_HEADS // N_KV_HEADS
    k = jnp.repeat(k, n_rep, axis=2)
    v = jnp.repeat(v, n_rep, axis=2)
    qh, kh, vh = (t.transpose(0, 2, 1, 3) for t in (q, k, v))
    scores = jnp.einsum("bhqd,bhkd->bhqk", qh, kh) / math.sqrt(HEAD_DIM)
    mask = jnp.tril(jnp.ones((s, s), dtype=bool))
    scores = jnp.where(mask[None, None], scores, -jnp.inf)
    p = jax.nn.softmax(scores, axis=-1)
    o = jnp.einsum("bhqk,bhkd->bhqd", p, vh).transpose(0, 2, 1, 3).reshape(b, s, -1)
    h = x + (o.reshape(b * s, -1) @ params["wo"]).reshape(b, s, d)

    hn2 = rmsnorm_ref(h, params["post_ln_w"])
    flat = hn2.reshape(b * s, d)
    mlp_out = (jax.nn.silu(flat @ params["wg"]) * (flat @ params["wu"])) @ params["wd"]
    return h + mlp_out.reshape(b, s, d)


# ---------------------------------------------------------------------------
if __name__ == "__main__":
    key = jax.random.PRNGKey(0)
    ks = jax.random.split(key, 8)
    scale = 0.05
    # Weights stored (in_features, out_features); biases=[] in the config, so
    # all Linear layers are bias-free.  RMSNorm weights initialised to ones.
    params = {
        "wq": jax.random.normal(ks[0], (DIM, N_HEADS * HEAD_DIM), jnp.float32) * scale,
        "wk": jax.random.normal(ks[1], (DIM, N_KV_HEADS * HEAD_DIM), jnp.float32) * scale,
        "wv": jax.random.normal(ks[2], (DIM, N_KV_HEADS * HEAD_DIM), jnp.float32) * scale,
        "wo": jax.random.normal(ks[3], (N_HEADS * HEAD_DIM, DIM), jnp.float32) * scale,
        "wg": jax.random.normal(ks[4], (DIM, FFN_DIM), jnp.float32) * scale,
        "wu": jax.random.normal(ks[5], (DIM, FFN_DIM), jnp.float32) * scale,
        "wd": jax.random.normal(ks[6], (FFN_DIM, DIM), jnp.float32) * scale,
        "input_ln_w": jnp.ones((1, DIM), jnp.float32),
        "post_ln_w": jnp.ones((1, DIM), jnp.float32),
    }

    # One-time packing (pre-concat, pre-cast bf16, attention scale folded in).
    packed = jax.tree_util.tree_map(jax.block_until_ready,
                                    pack_decoder_params(params))

    hidden_states = jax.random.normal(ks[7], (BATCH, SEQ, DIM), jnp.float32)
    cos3, sin3 = make_position_embeddings(BATCH, SEQ, HEAD_DIM, ROPE_THETA)

    out = decoder_layer_forward(packed, hidden_states, (cos3, sin3))
    out = jax.block_until_ready(out)

    ref = reference_forward(params, hidden_states, (cos3, sin3))
    assert out.shape == (BATCH, SEQ, DIM)
    assert bool(jnp.all(jnp.isfinite(out)))
    assert bool(jnp.allclose(out, ref, atol=5e-2, rtol=5e-2))
    print("KERNEL_OK")
</pallas_src>

<mosaic_0001>
module attributes {stable_mosaic.version = 11 : i64} {
  func.func @_decoder_layer_kernel(%arg0: memref<32x128xf32, #tpu.memory_space<vmem>>, %arg1: memref<128x256xbf16, #tpu.memory_space<vmem>>, %arg2: memref<128x128xbf16, #tpu.memory_space<vmem>>, %arg3: memref<128x512xbf16, #tpu.memory_space<vmem>>, %arg4: memref<256x128xbf16, #tpu.memory_space<vmem>>, %arg5: memref<1x128xf32, #tpu.memory_space<vmem>>, %arg6: memref<1x128xf32, #tpu.memory_space<vmem>>, %arg7: memref<32x128xf32, #tpu.memory_space<vmem>>, %arg8: memref<32x128xf32, #tpu.memory_space<vmem>>, %arg9: memref<32x128xf32, #tpu.memory_space<vmem>>, %arg10: memref<32x128xf32, #tpu.memory_space<vmem>>) attributes {dimension_semantics = [], scalar_prefetch = 0 : i64, scratch_operands = 1 : i64, tpu.core_type = #tpu.core_type<tc>} {
    %c0 = arith.constant 0 : index
    %c0_0 = arith.constant 0 : index
    %0 = vector.load %arg0[%c0, %c0_0] : memref<32x128xf32, #tpu.memory_space<vmem>>, vector<32x128xf32>
    %1 = arith.mulf %0, %0 : vector<32x128xf32>
    %cst = arith.constant dense<0.000000e+00> : vector<32xf32>
    %2 = vector.multi_reduction <add>, %1, %cst [1] : vector<32x128xf32> to vector<32xf32>
    %3 = vector.shape_cast %2 : vector<32xf32> to vector<32x1xf32>
    %cst_1 = arith.constant 1.280000e+02 : f32
    %4 = vector.broadcast %cst_1 : f32 to vector<32x1xf32>
    %5 = arith.divf %3, %4 : vector<32x1xf32>
    %cst_2 = arith.constant 9.99999997E-7 : f32
    %6 = vector.broadcast %cst_2 : f32 to vector<32x1xf32>
    %7 = arith.addf %5, %6 : vector<32x1xf32>
    %8 = math.rsqrt %7 : vector<32x1xf32>
    %9 = vector.broadcast %8 : vector<32x1xf32> to vector<32x128xf32>
    %10 = arith.mulf %0, %9 : vector<32x128xf32>
    %c0_3 = arith.constant 0 : index
    %c0_4 = arith.constant 0 : index
    %11 = vector.load %arg5[%c0_3, %c0_4] : memref<1x128xf32, #tpu.memory_space<vmem>>, vector<1x128xf32>
    %12 = vector.broadcast %11 : vector<1x128xf32> to vector<32x128xf32>
    %13 = arith.mulf %10, %12 : vector<32x128xf32>
    %14 = arith.truncf %13 : vector<32x128xf32> to vector<32x128xbf16>
    %c0_5 = arith.constant 0 : index
    %c0_6 = arith.constant 0 : index
    %15 = vector.load %arg1[%c0_5, %c0_6] : memref<128x256xbf16, #tpu.memory_space<vmem>>, vector<128x256xbf16>
    %cst_7 = arith.constant dense<0.000000e+00> : vector<32x256xf32>
    %16 = tpu.matmul %14, %15, %cst_7 {dimension_numbers = #tpu.dot_dimension_numbers<[1], [0], [0], [1], [0, 0, 1, 1], [], []>} : vector<32x128xbf16>, vector<128x256xbf16>, vector<32x256xf32> -> vector<32x256xf32>
    %17 = vector.extract_strided_slice %16 {offsets = [0, 0], sizes = [32, 128], strides = [1, 1]} : vector<32x256xf32> to vector<32x128xf32>
    %18 = vector.extract_strided_slice %16 {offsets = [0, 128], sizes = [32, 64], strides = [1, 1]} : vector<32x256xf32> to vector<32x64xf32>
    %19 = vector.extract_strided_slice %16 {offsets = [0, 192], sizes = [32, 64], strides = [1, 1]} : vector<32x256xf32> to vector<32x64xf32>
    %c0_8 = arith.constant 0 : index
    %c0_9 = arith.constant 0 : index
    %20 = vector.load %arg7[%c0_8, %c0_9] : memref<32x128xf32, #tpu.memory_space<vmem>>, vector<32x128xf32>
    %c0_10 = arith.constant 0 : index
    %c0_11 = arith.constant 0 : index
    %21 = vector.load %arg8[%c0_10, %c0_11] : memref<32x128xf32, #tpu.memory_space<vmem>>, vector<32x128xf32>
    %22 = arith.mulf %17, %20 : vector<32x128xf32>
    %23 = vector.extract_strided_slice %17 {offsets = [0, 16], sizes = [32, 16], strides = [1, 1]} : vector<32x128xf32> to vector<32x16xf32>
    %24 = vector.extract_strided_slice %17 {offsets = [0, 0], sizes = [32, 16], strides = [1, 1]} : vector<32x128xf32> to vector<32x16xf32>
    %25 = vector.extract_strided_slice %17 {offsets = [0, 48], sizes = [32, 16], strides = [1, 1]} : vector<32x128xf32> to vector<32x16xf32>
    %26 = vector.extract_strided_slice %17 {offsets = [0, 32], sizes = [32, 16], strides = [1, 1]} : vector<32x128xf32> to vector<32x16xf32>
    %27 = vector.extract_strided_slice %17 {offsets = [0, 80], sizes = [32, 16], strides = [1, 1]} : vector<32x128xf32> to vector<32x16xf32>
    %28 = vector.extract_strided_slice %17 {offsets = [0, 64], sizes = [32, 16], strides = [1, 1]} : vector<32x128xf32> to vector<32x16xf32>
    %29 = vector.extract_strided_slice %17 {offsets = [0, 112], sizes = [32, 16], strides = [1, 1]} : vector<32x128xf32> to vector<32x16xf32>
    %30 = vector.extract_strided_slice %17 {offsets = [0, 96], sizes = [32, 16], strides = [1, 1]} : vector<32x128xf32> to vector<32x16xf32>
    %31 = tpu.concatenate %23, %24, %25, %26, %27, %28, %29, %30 in 1 : vector<32x16xf32>, vector<32x16xf32>, vector<32x16xf32>, vector<32x16xf32>, vector<32x16xf32>, vector<32x16xf32>, vector<32x16xf32>, vector<32x16xf32> -> vector<32x128xf32>
    %32 = arith.mulf %31, %21 : vector<32x128xf32>
    %33 = arith.addf %22, %32 : vector<32x128xf32>
    %34 = arith.truncf %33 : vector<32x128xf32> to vector<32x128xbf16>
    %35 = vector.extract_strided_slice %20 {offsets = [0, 0], sizes = [32, 64], strides = [1, 1]} : vector<32x128xf32> to vector<32x64xf32>
    %36 = arith.mulf %18, %35 : vector<32x64xf32>
    %37 = vector.extract_strided_slice %18 {offsets = [0, 16], sizes = [32, 16], strides = [1, 1]} : vector<32x64xf32> to vector<32x16xf32>
    %38 = vector.extract_strided_slice %18 {offsets = [0, 0], sizes = [32, 16], strides = [1, 1]} : vector<32x64xf32> to vector<32x16xf32>
    %39 = vector.extract_strided_slice %18 {offsets = [0, 48], sizes = [32, 16], strides = [1, 1]} : vector<32x64xf32> to vector<32x16xf32>
    %40 = vector.extract_strided_slice %18 {offsets = [0, 32], sizes = [32, 16], strides = [1, 1]} : vector<32x64xf32> to vector<32x16xf32>
    %41 = tpu.concatenate %37, %38, %39, %40 in 1 : vector<32x16xf32>, vector<32x16xf32>, vector<32x16xf32>, vector<32x16xf32> -> vector<32x64xf32>
    %42 = vector.extract_strided_slice %21 {offsets = [0, 0], sizes = [32, 64], strides = [1, 1]} : vector<32x128xf32> to vector<32x64xf32>
    %43 = arith.mulf %41, %42 : vector<32x64xf32>
    %44 = arith.addf %36, %43 : vector<32x64xf32>
    %45 = arith.truncf %44 : vector<32x64xf32> to vector<32x64xbf16>
    %46 = arith.truncf %19 : vector<32x64xf32> to vector<32x64xbf16>
    %47 = tpu.iota {dimensions = array<i32: 0>} : vector<32x16xi32>
    %c16_i32 = arith.constant 16 : i32
    %c0_i32 = arith.constant 0 : i32
    %48 = arith.cmpi eq, %c16_i32, %c0_i32 : i32
    %c1_i32 = arith.constant 1 : i32
    %49 = arith.select %48, %c1_i32, %c16_i32 : i32
    %50 = vector.broadcast %49 : i32 to vector<32x16xi32>
    %51 = arith.remsi %47, %50 : vector<32x16xi32>
    %c0_i32_12 = arith.constant 0 : i32
    %52 = vector.broadcast %c0_i32_12 : i32 to vector<32x16xi32>
    %53 = arith.cmpi ne, %51, %52 : vector<32x16xi32>
    %c0_i32_13 = arith.constant 0 : i32
    %54 = vector.broadcast %c0_i32_13 : i32 to vector<32x16xi32>
    %55 = arith.cmpi slt, %51, %54 : vector<32x16xi32>
    %c0_i32_14 = arith.constant 0 : i32
    %56 = arith.cmpi slt, %49, %c0_i32_14 : i32
    %57 = vector.broadcast %56 : i1 to vector<32x16xi1>
    %58 = vector.broadcast %57 : vector<32x16xi1> to vector<32x16xi1>
    %59 = arith.xori %55, %58 : vector<32x16xi1>
    %60 = arith.andi %59, %53 : vector<32x16xi1>
    %61 = vector.broadcast %49 : i32 to vector<32x16xi32>
    %62 = arith.addi %51, %61 : vector<32x16xi32>
    %63 = arith.select %60, %62, %51 : vector<32x16xi1>, vector<32x16xi32>
    %64 = tpu.iota {dimensions = array<i32: 1>} : vector<32x16xi32>
    %65 = arith.cmpi sle, %64, %63 : vector<32x16xi32>
    %66 = vector.extract_strided_slice %45 {offsets = [0, 0], sizes = [16, 32], strides = [1, 1]} : vector<32x64xbf16> to vector<16x32xbf16>
    %67 = vector.extract_strided_slice %46 {offsets = [0, 0], sizes = [16, 32], strides = [1, 1]} : vector<32x64xbf16> to vector<16x32xbf16>
    %68 = vector.extract_strided_slice %34 {offsets = [0, 0], sizes = [16, 32], strides = [1, 1]} : vector<32x128xbf16> to vector<16x32xbf16>
    %69 = vector.extract_strided_slice %34 {offsets = [0, 32], sizes = [16, 32], strides = [1, 1]} : vector<32x128xbf16> to vector<16x32xbf16>
    %70 = tpu.concatenate %68, %69 in 0 : vector<16x32xbf16>, vector<16x32xbf16> -> vector<32x32xbf16>
    %cst_15 = arith.constant dense<0.000000e+00> : vector<32x16xf32>
    %71 = tpu.matmul %70, %66, %cst_15 {dimension_numbers = #tpu.dot_dimension_numbers<[1], [1], [0], [0], [0, 0, 1, 0], [], []>} : vector<32x32xbf16>, vector<16x32xbf16>, vector<32x16xf32> -> vector<32x16xf32>
    %cst_16 = arith.constant -1.000000e+30 : f32
    %72 = vector.broadcast %cst_16 : f32 to vector<32x16xf32>
    %73 = arith.select %65, %71, %72 : vector<32x16xi1>, vector<32x16xf32>
    %cst_17 = arith.constant dense<0xFF800000> : vector<32xf32>
    %74 = vector.multi_reduction <maximumf>, %73, %cst_17 [1] : vector<32x16xf32> to vector<32xf32>
    %75 = vector.shape_cast %74 : vector<32xf32> to vector<32x1xf32>
    %76 = vector.broadcast %75 : vector<32x1xf32> to vector<32x16xf32>
    %77 = arith.subf %73, %76 : vector<32x16xf32>
    %78 = math.exp %77 : vector<32x16xf32>
    %cst_18 = arith.constant dense<0.000000e+00> : vector<32xf32>
    %79 = vector.multi_reduction <add>, %78, %cst_18 [1] : vector<32x16xf32> to vector<32xf32>
    %80 = vector.shape_cast %79 : vector<32xf32> to vector<32x1xf32>
    %81 = arith.truncf %78 : vector<32x16xf32> to vector<32x16xbf16>
    %cst_19 = arith.constant dense<0.000000e+00> : vector<32x32xf32>
    %82 = tpu.matmul %81, %67, %cst_19 {dimension_numbers = #tpu.dot_dimension_numbers<[1], [0], [0], [1], [0, 0, 1, 1], [], []>} : vector<32x16xbf16>, vector<16x32xbf16>, vector<32x32xf32> -> vector<32x32xf32>
    %83 = tpu.reciprocal %80 {approx = true} : vector<32x1xf32> -> vector<32x1xf32>
    %84 = vector.broadcast %83 : vector<32x1xf32> to vector<32x32xf32>
    %85 = arith.mulf %82, %84 : vector<32x32xf32>
    %86 = vector.extract_strided_slice %85 {offsets = [0, 0], sizes = [16, 32], strides = [1, 1]} : vector<32x32xf32> to vector<16x32xf32>
    %c0_20 = arith.constant 0 : index
    %c0_21 = arith.constant 0 : index
    %87 = vector.load %arg10[%c0_20, %c0_21] : memref<32x128xf32, #tpu.memory_space<vmem>>, vector<16x32xf32>
    tpu.vector_store %arg10[%c0_20, %c0_21], %86 {strides = array<i32>} : memref<32x128xf32, #tpu.memory_space<vmem>>, vector<16x32xf32>,
    %88 = vector.extract_strided_slice %85 {offsets = [16, 0], sizes = [16, 32], strides = [1, 1]} : vector<32x32xf32> to vector<16x32xf32>
    %c0_22 = arith.constant 0 : index
    %c32 = arith.constant 32 : index
    %89 = vector.load %arg10[%c0_22, %c32] : memref<32x128xf32, #tpu.memory_space<vmem>>, vector<16x32xf32>
    tpu.vector_store %arg10[%c0_22, %c32], %88 {strides = array<i32>} : memref<32x128xf32, #tpu.memory_space<vmem>>, vector<16x32xf32>,
    %90 = vector.extract_strided_slice %45 {offsets = [0, 32], sizes = [16, 32], strides = [1, 1]} : vector<32x64xbf16> to vector<16x32xbf16>
    %91 = vector.extract_strided_slice %46 {offsets = [0, 32], sizes = [16, 32], strides = [1, 1]} : vector<32x64xbf16> to vector<16x32xbf16>
    %92 = vector.extract_strided_slice %34 {offsets = [0, 64], sizes = [16, 32], strides = [1, 1]} : vector<32x128xbf16> to vector<16x32xbf16>
    %93 = vector.extract_strided_slice %34 {offsets = [0, 96], sizes = [16, 32], strides = [1, 1]} : vector<32x128xbf16> to vector<16x32xbf16>
    %94 = tpu.concatenate %92, %93 in 0 : vector<16x32xbf16>, vector<16x32xbf16> -> vector<32x32xbf16>
    %cst_23 = arith.constant dense<0.000000e+00> : vector<32x16xf32>
    %95 = tpu.matmul %94, %90, %cst_23 {dimension_numbers = #tpu.dot_dimension_numbers<[1], [1], [0], [0], [0, 0, 1, 0], [], []>} : vector<32x32xbf16>, vector<16x32xbf16>, vector<32x16xf32> -> vector<32x16xf32>
    %cst_24 = arith.constant -1.000000e+30 : f32
    %96 = vector.broadcast %cst_24 : f32 to vector<32x16xf32>
    %97 = arith.select %65, %95, %96 : vector<32x16xi1>, vector<32x16xf32>
    %cst_25 = arith.constant dense<0xFF800000> : vector<32xf32>
    %98 = vector.multi_reduction <maximumf>, %97, %cst_25 [1] : vector<32x16xf32> to vector<32xf32>
    %99 = vector.shape_cast %98 : vector<32xf32> to vector<32x1xf32>
    %100 = vector.broadcast %99 : vector<32x1xf32> to vector<32x16xf32>
    %101 = arith.subf %97, %100 : vector<32x16xf32>
    %102 = math.exp %101 : vector<32x16xf32>
    %cst_26 = arith.constant dense<0.000000e+00> : vector<32xf32>
    %103 = vector.multi_reduction <add>, %102, %cst_26 [1] : vector<32x16xf32> to vector<32xf32>
    %104 = vector.shape_cast %103 : vector<32xf32> to vector<32x1xf32>
    %105 = arith.truncf %102 : vector<32x16xf32> to vector<32x16xbf16>
    %cst_27 = arith.constant dense<0.000000e+00> : vector<32x32xf32>
    %106 = tpu.matmul %105, %91, %cst_27 {dimension_numbers = #tpu.dot_dimension_numbers<[1], [0], [0], [1], [0, 0, 1, 1], [], []>} : vector<32x16xbf16>, vector<16x32xbf16>, vector<32x32xf32> -> vector<32x32xf32>
    %107 = tpu.reciprocal %104 {approx = true} : vector<32x1xf32> -> vector<32x1xf32>
    %108 = vector.broadcast %107 : vector<32x1xf32> to vector<32x32xf32>
    %109 = arith.mulf %106, %108 : vector<32x32xf32>
    %110 = vector.extract_strided_slice %109 {offsets = [0, 0], sizes = [16, 32], strides = [1, 1]} : vector<32x32xf32> to vector<16x32xf32>
    %c0_28 = arith.constant 0 : index
    %c64 = arith.constant 64 : index
    %111 = vector.load %arg10[%c0_28, %c64] : memref<32x128xf32, #tpu.memory_space<vmem>>, vector<16x32xf32>
    tpu.vector_store %arg10[%c0_28, %c64], %110 {strides = array<i32>} : memref<32x128xf32, #tpu.memory_space<vmem>>, vector<16x32xf32>,
    %112 = vector.extract_strided_slice %109 {offsets = [16, 0], sizes = [16, 32], strides = [1, 1]} : vector<32x32xf32> to vector<16x32xf32>
    %c0_29 = arith.constant 0 : index
    %c96 = arith.constant 96 : index
    %113 = vector.load %arg10[%c0_29, %c96] : memref<32x128xf32, #tpu.memory_space<vmem>>, vector<16x32xf32>
    tpu.vector_store %arg10[%c0_29, %c96], %112 {strides = array<i32>} : memref<32x128xf32, #tpu.memory_space<vmem>>, vector<16x32xf32>,
    %114 = vector.extract_strided_slice %45 {offsets = [16, 0], sizes = [16, 32], strides = [1, 1]} : vector<32x64xbf16> to vector<16x32xbf16>
    %115 = vector.extract_strided_slice %46 {offsets = [16, 0], sizes = [16, 32], strides = [1, 1]} : vector<32x64xbf16> to vector<16x32xbf16>
    %116 = vector.extract_strided_slice %34 {offsets = [16, 0], sizes = [16, 32], strides = [1, 1]} : vector<32x128xbf16> to vector<16x32xbf16>
    %117 = vector.extract_strided_slice %34 {offsets = [16, 32], sizes = [16, 32], strides = [1, 1]} : vector<32x128xbf16> to vector<16x32xbf16>
    %118 = tpu.concatenate %116, %117 in 0 : vector<16x32xbf16>, vector<16x32xbf16> -> vector<32x32xbf16>
    %cst_30 = arith.constant dense<0.000000e+00> : vector<32x16xf32>
    %119 = tpu.matmul %118, %114, %cst_30 {dimension_numbers = #tpu.dot_dimension_numbers<[1], [1], [0], [0], [0, 0, 1, 0], [], []>} : vector<32x32xbf16>, vector<16x32xbf16>, vector<32x16xf32> -> vector<32x16xf32>
    %cst_31 = arith.constant -1.000000e+30 : f32
    %120 = vector.broadcast %cst_31 : f32 to vector<32x16xf32>
    %121 = arith.select %65, %119, %120 : vector<32x16xi1>, vector<32x16xf32>
    %cst_32 = arith.constant dense<0xFF800000> : vector<32xf32>
    %122 = vector.multi_reduction <maximumf>, %121, %cst_32 [1] : vector<32x16xf32> to vector<32xf32>
    %123 = vector.shape_cast %122 : vector<32xf32> to vector<32x1xf32>
    %124 = vector.broadcast %123 : vector<32x1xf32> to vector<32x16xf32>
    %125 = arith.subf %121, %124 : vector<32x16xf32>
    %126 = math.exp %125 : vector<32x16xf32>
    %cst_33 = arith.constant dense<0.000000e+00> : vector<32xf32>
    %127 = vector.multi_reduction <add>, %126, %cst_33 [1] : vector<32x16xf32> to vector<32xf32>
    %128 = vector.shape_cast %127 : vector<32xf32> to vector<32x1xf32>
    %129 = arith.truncf %126 : vector<32x16xf32> to vector<32x16xbf16>
    %cst_34 = arith.constant dense<0.000000e+00> : vector<32x32xf32>
    %130 = tpu.matmul %129, %115, %cst_34 {dimension_numbers = #tpu.dot_dimension_numbers<[1], [0], [0], [1], [0, 0, 1, 1], [], []>} : vector<32x16xbf16>, vector<16x32xbf16>, vector<32x32xf32> -> vector<32x32xf32>
    %131 = tpu.reciprocal %128 {approx = true} : vector<32x1xf32> -> vector<32x1xf32>
    %132 = vector.broadcast %131 : vector<32x1xf32> to vector<32x32xf32>
    %133 = arith.mulf %130, %132 : vector<32x32xf32>
    %134 = vector.extract_strided_slice %133 {offsets = [0, 0], sizes = [16, 32], strides = [1, 1]} : vector<32x32xf32> to vector<16x32xf32>
    %c16 = arith.constant 16 : index
    %c0_35 = arith.constant 0 : index
    %135 = vector.load %arg10[%c16, %c0_35] : memref<32x128xf32, #tpu.memory_space<vmem>>, vector<16x32xf32>
    tpu.vector_store %arg10[%c16, %c0_35], %134 {strides = array<i32>} : memref<32x128xf32, #tpu.memory_space<vmem>>, vector<16x32xf32>,
    %136 = vector.extract_strided_slice %133 {offsets = [16, 0], sizes = [16, 32], strides = [1, 1]} : vector<32x32xf32> to vector<16x32xf32>
    %c16_36 = arith.constant 16 : index
    %c32_37 = arith.constant 32 : index
    %137 = vector.load %arg10[%c16_36, %c32_37] : memref<32x128xf32, #tpu.memory_space<vmem>>, vector<16x32xf32>
    tpu.vector_store %arg10[%c16_36, %c32_37], %136 {strides = array<i32>} : memref<32x128xf32, #tpu.memory_space<vmem>>, vector<16x32xf32>,
    %138 = vector.extract_strided_slice %45 {offsets = [16, 32], sizes = [16, 32], strides = [1, 1]} : vector<32x64xbf16> to vector<16x32xbf16>
    %139 = vector.extract_strided_slice %46 {offsets = [16, 32], sizes = [16, 32], strides = [1, 1]} : vector<32x64xbf16> to vector<16x32xbf16>
    %140 = vector.extract_strided_slice %34 {offsets = [16, 64], sizes = [16, 32], strides = [1, 1]} : vector<32x128xbf16> to vector<16x32xbf16>
    %141 = vector.extract_strided_slice %34 {offsets = [16, 96], sizes = [16, 32], strides = [1, 1]} : vector<32x128xbf16> to vector<16x32xbf16>
    %142 = tpu.concatenate %140, %141 in 0 : vector<16x32xbf16>, vector<16x32xbf16> -> vector<32x32xbf16>
    %cst_38 = arith.constant dense<0.000000e+00> : vector<32x16xf32>
    %143 = tpu.matmul %142, %138, %cst_38 {dimension_numbers = #tpu.dot_dimension_numbers<[1], [1], [0], [0], [0, 0, 1, 0], [], []>} : vector<32x32xbf16>, vector<16x32xbf16>, vector<32x16xf32> -> vector<32x16xf32>
    %cst_39 = arith.constant -1.000000e+30 : f32
    %144 = vector.broadcast %cst_39 : f32 to vector<32x16xf32>
    %145 = arith.select %65, %143, %144 : vector<32x16xi1>, vector<32x16xf32>
    %cst_40 = arith.constant dense<0xFF800000> : vector<32xf32>
    %146 = vector.multi_reduction <maximumf>, %145, %cst_40 [1] : vector<32x16xf32> to vector<32xf32>
    %147 = vector.shape_cast %146 : vector<32xf32> to vector<32x1xf32>
    %148 = vector.broadcast %147 : vector<32x1xf32> to vector<32x16xf32>
    %149 = arith.subf %145, %148 : vector<32x16xf32>
    %150 = math.exp %149 : vector<32x16xf32>
    %cst_41 = arith.constant dense<0.000000e+00> : vector<32xf32>
    %151 = vector.multi_reduction <add>, %150, %cst_41 [1] : vector<32x16xf32> to vector<32xf32>
    %152 = vector.shape_cast %151 : vector<32xf32> to vector<32x1xf32>
    %153 = arith.truncf %150 : vector<32x16xf32> to vector<32x16xbf16>
    %cst_42 = arith.constant dense<0.000000e+00> : vector<32x32xf32>
    %154 = tpu.matmul %153, %139, %cst_42 {dimension_numbers = #tpu.dot_dimension_numbers<[1], [0], [0], [1], [0, 0, 1, 1], [], []>} : vector<32x16xbf16>, vector<16x32xbf16>, vector<32x32xf32> -> vector<32x32xf32>
    %155 = tpu.reciprocal %152 {approx = true} : vector<32x1xf32> -> vector<32x1xf32>
    %156 = vector.broadcast %155 : vector<32x1xf32> to vector<32x32xf32>
    %157 = arith.mulf %154, %156 : vector<32x32xf32>
    %158 = vector.extract_strided_slice %157 {offsets = [0, 0], sizes = [16, 32], strides = [1, 1]} : vector<32x32xf32> to vector<16x32xf32>
    %c16_43 = arith.constant 16 : index
    %c64_44 = arith.constant 64 : index
    %159 = vector.load %arg10[%c16_43, %c64_44] : memref<32x128xf32, #tpu.memory_space<vmem>>, vector<16x32xf32>
    tpu.vector_store %arg10[%c16_43, %c64_44], %158 {strides = array<i32>} : memref<32x128xf32, #tpu.memory_space<vmem>>, vector<16x32xf32>,
    %160 = vector.extract_strided_slice %157 {offsets = [16, 0], sizes = [16, 32], strides = [1, 1]} : vector<32x32xf32> to vector<16x32xf32>
    %c16_45 = arith.constant 16 : index
    %c96_46 = arith.constant 96 : index
    %161 = vector.load %arg10[%c16_45, %c96_46] : memref<32x128xf32, #tpu.memory_space<vmem>>, vector<16x32xf32>
    tpu.vector_store %arg10[%c16_45, %c96_46], %160 {strides = array<i32>} : memref<32x128xf32, #tpu.memory_space<vmem>>, vector<16x32xf32>,
    %c0_47 = arith.constant 0 : index
    %c0_48 = arith.constant 0 : index
    %162 = vector.load %arg10[%c0_47, %c0_48] : memref<32x128xf32, #tpu.memory_space<vmem>>, vector<32x128xf32>
    %163 = arith.truncf %162 : vector<32x128xf32> to vector<32x128xbf16>
    %c0_49 = arith.constant 0 : index
    %c0_50 = arith.constant 0 : index
    %164 = vector.load %arg2[%c0_49, %c0_50] : memref<128x128xbf16, #tpu.memory_space<vmem>>, vector<128x128xbf16>
    %cst_51 = arith.constant dense<0.000000e+00> : vector<32x128xf32>
    %165 = tpu.matmul %163, %164, %cst_51 {dimension_numbers = #tpu.dot_dimension_numbers<[1], [0], [0], [1], [0, 0, 1, 1], [], []>} : vector<32x128xbf16>, vector<128x128xbf16>, vector<32x128xf32> -> vector<32x128xf32>
    %166 = arith.addf %0, %165 : vector<32x128xf32>
    %167 = arith.mulf %166, %166 : vector<32x128xf32>
    %cst_52 = arith.constant dense<0.000000e+00> : vector<32xf32>
    %168 = vector.multi_reduction <add>, %167, %cst_52 [1] : vector<32x128xf32> to vector<32xf32>
    %169 = vector.shape_cast %168 : vector<32xf32> to vector<32x1xf32>
    %cst_53 = arith.constant 1.280000e+02 : f32
    %170 = vector.broadcast %cst_53 : f32 to vector<32x1xf32>
    %171 = arith.divf %169, %170 : vector<32x1xf32>
    %cst_54 = arith.constant 9.99999997E-7 : f32
    %172 = vector.broadcast %cst_54 : f32 to vector<32x1xf32>
    %173 = arith.addf %171, %172 : vector<32x1xf32>
    %174 = math.rsqrt %173 : vector<32x1xf32>
    %175 = vector.broadcast %174 : vector<32x1xf32> to vector<32x128xf32>
    %176 = arith.mulf %166, %175 : vector<32x128xf32>
    %c0_55 = arith.constant 0 : index
    %c0_56 = arith.constant 0 : index
    %177 = vector.load %arg6[%c0_55, %c0_56] : memref<1x128xf32, #tpu.memory_space<vmem>>, vector<1x128xf32>
    %178 = vector.broadcast %177 : vector<1x128xf32> to vector<32x128xf32>
    %179 = arith.mulf %176, %178 : vector<32x128xf32>
    %180 = arith.truncf %179 : vector<32x128xf32> to vector<32x128xbf16>
    %c0_57 = arith.constant 0 : index
    %c0_58 = arith.constant 0 : index
    %181 = vector.load %arg3[%c0_57, %c0_58] : memref<128x512xbf16, #tpu.memory_space<vmem>>, vector<128x512xbf16>
    %cst_59 = arith.constant dense<0.000000e+00> : vector<32x512xf32>
    %182 = tpu.matmul %180, %181, %cst_59 {dimension_numbers = #tpu.dot_dimension_numbers<[1], [0], [0], [1], [0, 0, 1, 1], [], []>} : vector<32x128xbf16>, vector<128x512xbf16>, vector<32x512xf32> -> vector<32x512xf32>
    %183 = vector.extract_strided_slice %182 {offsets = [0, 0], sizes = [32, 256], strides = [1, 1]} : vector<32x512xf32> to vector<32x256xf32>
    %184 = vector.extract_strided_slice %182 {offsets = [0, 256], sizes = [32, 256], strides = [1, 1]} : vector<32x512xf32> to vector<32x256xf32>
    %185 = arith.negf %183 : vector<32x256xf32>
    %186 = math.exp %185 : vector<32x256xf32>
    %cst_60 = arith.constant 1.000000e+00 : f32
    %187 = vector.broadcast %cst_60 : f32 to vector<32x256xf32>
    %188 = arith.addf %187, %186 : vector<32x256xf32>
    %189 = arith.divf %187, %188 : vector<32x256xf32>
    %190 = arith.mulf %183, %189 : vector<32x256xf32>
    %191 = arith.mulf %190, %184 : vector<32x256xf32>
    %192 = arith.truncf %191 : vector<32x256xf32> to vector<32x256xbf16>
    %c0_61 = arith.constant 0 : index
    %c0_62 = arith.constant 0 : index
    %193 = vector.load %arg4[%c0_61, %c0_62] : memref<256x128xbf16, #tpu.memory_space<vmem>>, vector<256x128xbf16>
    %cst_63 = arith.constant dense<0.000000e+00> : vector<32x128xf32>
    %194 = tpu.matmul %192, %193, %cst_63 {dimension_numbers = #tpu.dot_dimension_numbers<[1], [0], [0], [1], [0, 0, 1, 1], [], []>} : vector<32x256xbf16>, vector<256x128xbf16>, vector<32x128xf32> -> vector<32x128xf32>
    %195 = arith.addf %166, %194 : vector<32x128xf32>
    %c0_64 = arith.constant 0 : index
    %c0_65 = arith.constant 0 : index
    %196 = vector.load %arg9[%c0_64, %c0_65] : memref<32x128xf32, #tpu.memory_space<vmem>>, vector<32x128xf32>
    tpu.vector_store %arg9[%c0_64, %c0_65], %195 {strides = array<i32>} : memref<32x128xf32, #tpu.memory_space<vmem>>, vector<32x128xf32>,
    return
  }
}

</mosaic_0001>

<bundles_post_ra>
// kernel: tpu_custom_call.1
= control target key start
LH: loop header
LB: loop body
LE: loop exit
PB: predicated region body
PF: predicated region fallthrough
CT: control target
= control target key end

     0   :  { %14 = vsyncpa [#allocation4], 0  ;;  %s3196_s0 = inlined_call_operand.hbm [shape: f32[32,128], index: 0, kind: input, shape index: {}]   ;;  %s3197_s1 = inlined_call_operand.hbm [shape: bf16[128,256], index: 1, kind: input, shape index: {}]   ;;  %s3198_s2 = inlined_call_operand.hbm [shape: bf16[128,128], index: 2, kind: input, shape index: {}]   ;;  %s3199_s3 = inlined_call_operand.hbm [shape: bf16[128,512], index: 3, kind: input, shape index: {}]   ;;  %s3200_s4 = inlined_call_operand.hbm [shape: bf16[256,128], index: 4, kind: input, shape index: {}]   ;;  %s3201_s5 = inlined_call_operand.vmem [shape: f32[1,128], index: 5, kind: input, shape index: {}]   ;;  %s3202_s6 = inlined_call_operand.vmem [shape: f32[1,128], index: 6, kind: input, shape index: {}]   ;;  %s3203_s7 = inlined_call_operand.hbm [shape: f32[32,128], index: 7, kind: input, shape index: {}]   ;;  %s3204_s8 = inlined_call_operand.hbm [shape: f32[32,128], index: 8, kind: input, shape index: {}]   ;;  %s3205_s9 = inlined_call_operand.hbm [shape: f32[32,128], index: 9, kind: output, shape index: {}]  }
   0x1   :  { %15 = vsyncpa [#allocation7], 0 }
   0x2   :  { %16 = vsyncpa [#allocation10], 0 }
   0x3   :  { %17 = vsyncpa [#allocation13], 0 }
   0x4   :  { %18 = vsyncpa [#allocation5], 0  ;;  %s2660_s30 = smov [#allocation6]   ;;  %s2661_s11 = smov [#allocation9]  }
   0x5   :  { %s36_s10 = sshll.u32 %s2660_s30, 4  ;;  %s60_s12 = sshll.u32 %s2661_s11, 4  ;;  %s37_s10 = int_to_ptr.vmem [resolvable:$true] %s36_s10  ;;  %s2728_s12 = int_to_ptr.vmem [resolvable:$true] %s60_s12 }
   0x6   :  { %s2474_s15 = scalar_lea.hbm %s3197_s1, 2048 }
   0x7   :  { %p2475_p0 = scmp.ne.s32.totalorder %s3197_s1, %s2474_s15  ;;  %p2478_p1 = scmp.lt.u32.totalorder %s2474_s15, %s3197_s1 }
   0x9   :  { %p2480_p2 = pnand %p2478_p1, %p2475_p0 }
   0xb   :  { %2483 = shalt.err (!%p2480_p2)
}
   0xc   :  { %s2484_s20 = scalar_lea.vmem %s37_s10, 2048  ;;  %p2489_p4 = scmp.lt.s32.totalorder %s37_s10, %s37_s10 }
   0xd   :  { %p2485_p3 = scmp.ne.s32.totalorder %s37_s10, %s2484_s20  ;;  %p2490_p5 = scmp.lt.s32.totalorder %s2484_s20, %s2484_s20 }
   0xf   :  { %p2491_p6 = por %p2490_p5, %p2489_p4 }
  0x11   :  { %p2492_p7 = pnand %p2491_p6, %p2485_p3 }
  0x13   :  { %2495 = shalt.err (!%p2492_p7)
}
  0x14   :  { %s2662_s21 = smov 128   ;;  %s2663_s22 = smov 8  }
  0x15   :  { %42 = dma.hbm_to_vmem [thread:$0]  %s3197_s1, 2048, %s37_s10, [#allocation7], %s2662_s21, %s2662_s21, %s2663_s22  }
  0x16   :  { %s2496_s27 = scalar_lea.hbm %s3199_s3, 4096 }
  0x17   :  { %p2497_p8 = scmp.ne.s32.totalorder %s3199_s3, %s2496_s27  ;;  %p2500_p9 = scmp.lt.u32.totalorder %s2496_s27, %s3199_s3 }
  0x19   :  { %p2502_p10 = pnand %p2500_p9, %p2497_p8 }
  0x1b   :  { %2505 = shalt.err (!%p2502_p10)
}
  0x1c   :  { %s2506_s13 = scalar_lea.vmem %s2728_s12, 4096  ;;  %p2511_p12 = scmp.lt.s32.totalorder %s2728_s12, %s2728_s12 }
  0x1d   :  { %p2507_p11 = scmp.ne.s32.totalorder %s2728_s12, %s2506_s13  ;;  %p2512_p13 = scmp.lt.s32.totalorder %s2506_s13, %s2506_s13 }
  0x1f   :  { %p2513_p0 = por %p2512_p13, %p2511_p12 }
  0x21   :  { %p2514_p1 = pnand %p2513_p0, %p2507_p11 }
  0x23   :  { %2517 = shalt.err (!%p2514_p1)
}
  0x24   :  { %s2664_s1 = smov 256   ;;  %s2665_s10 = smov 16  }
  0x25   :  { %66 = dma.hbm_to_vmem [thread:$0]  %s3199_s3, 4096, %s2728_s12, [#allocation10], %s2664_s1, %s2664_s1, %s2665_s10  }
  0x26   :  { %s2666_s16 = smov [#allocation12]   ;;  %s2667_s18 = smov [#allocation3]  }
  0x27   :  { %s88_s17 = sshll.u32 %s2666_s16, 4  ;;  %s24_s19 = sshll.u32 %s2667_s18, 4  ;;  %s89_s17 = int_to_ptr.vmem [resolvable:$true] %s88_s17  ;;  %s2763_s19 = int_to_ptr.vmem [resolvable:$true] %s24_s19 }
  0x28   :  { %s2518_s24 = scalar_lea.hbm %s3203_s7, 512 }
  0x29   :  { %p2519_p2 = scmp.ne.s32.totalorder %s3203_s7, %s2518_s24  ;;  %p2522_p3 = scmp.lt.u32.totalorder %s2518_s24, %s3203_s7 }
  0x2b   :  { %p2524_p4 = pnand %p2522_p3, %p2519_p2 }
  0x2d   :  { %2527 = shalt.err (!%p2524_p4)
}
  0x2e   :  { %s2528_s3 = scalar_lea.vmem %s89_s17, 512  ;;  %p2533_p6 = scmp.lt.s32.totalorder %s89_s17, %s89_s17 }
  0x2f   :  { %p2529_p5 = scmp.ne.s32.totalorder %s89_s17, %s2528_s3  ;;  %p2534_p7 = scmp.lt.s32.totalorder %s2528_s3, %s2528_s3 }
  0x31   :  { %p2535_p8 = por %p2534_p7, %p2533_p6 }
  0x33   :  { %p2536_p9 = pnand %p2535_p8, %p2529_p5 }
  0x35   :  { %2539 = shalt.err (!%p2536_p9)
}
  0x36   :  { %94 = dma.hbm_to_vmem [thread:$0]  %s3203_s7, 512, %s89_s17, [#allocation13], %s2662_s21, %s2662_s21, %s2663_s22  }
  0x37   :  { %s2540_s13 = scalar_lea.hbm %s3196_s0, 512 }
  0x38   :  { %p2541_p10 = scmp.ne.s32.totalorder %s3196_s0, %s2540_s13  ;;  %p2544_p11 = scmp.lt.u32.totalorder %s2540_s13, %s3196_s0 }
  0x3a   :  { %p2546_p12 = pnand %p2544_p11, %p2541_p10 }
  0x3c   :  { %2549 = shalt.err (!%p2546_p12)
}
  0x3d   :  { %s2550_s18 = scalar_lea.vmem %s2763_s19, 512  ;;  %p2555_p0 = scmp.lt.s32.totalorder %s2763_s19, %s2763_s19 }
  0x3e   :  { %p2551_p13 = scmp.ne.s32.totalorder %s2763_s19, %s2550_s18  ;;  %p2556_p1 = scmp.lt.s32.totalorder %s2550_s18, %s2550_s18 }
  0x40   :  { %p2557_p2 = por %p2556_p1, %p2555_p0 }
  0x42   :  { %p2558_p3 = pnand %p2557_p2, %p2551_p13 }
  0x44   :  { %2561 = shalt.err (!%p2558_p3)
}
  0x45   :  { %30 = dma.hbm_to_vmem [thread:$0]  %s3196_s0, 512, %s2763_s19, [#allocation4], %s2662_s21, %s2662_s21, %s2663_s22  }
  0x46   :  { %s2668_s20 = smov [#allocation8]   ;;  %s2562_s26 = scalar_lea.hbm %s3198_s2, 1024 }
  0x47   :  { %s48_s23 = sshll.u32 %s2668_s20, 4  ;;  %p2563_p4 = scmp.ne.s32.totalorder %s3198_s2, %s2562_s26  ;;  %s49_s23 = int_to_ptr.vmem [resolvable:$true] %s48_s23 }
  0x48   :  { %p2566_p5 = scmp.lt.u32.totalorder %s2562_s26, %s3198_s2 }
  0x4a   :  { %p2568_p6 = pnand %p2566_p5, %p2563_p4 }
  0x4c   :  { %2571 = shalt.err (!%p2568_p6)
}
  0x4d   :  { %s2572_s29 = scalar_lea.vmem %s49_s23, 1024  ;;  %p2577_p8 = scmp.lt.s32.totalorder %s49_s23, %s49_s23 }
  0x4e   :  { %p2573_p7 = scmp.ne.s32.totalorder %s49_s23, %s2572_s29  ;;  %p2578_p9 = scmp.lt.s32.totalorder %s2572_s29, %s2572_s29 }
  0x50   :  { %p2579_p10 = por %p2578_p9, %p2577_p8 }
  0x52   :  { %p2580_p11 = pnand %p2579_p10, %p2573_p7 }
  0x54   :  { %2583 = shalt.err (!%p2580_p11)
}
  0x55   :  { %s2669_s0 = smov 64   ;;  %s2670_s19 = smov 4  }
  0x56   :  { %54 = dma.hbm_to_vmem [thread:$0]  %s3198_s2, 1024, %s49_s23, [#allocation7], %s2669_s0, %s2669_s0, %s2670_s19  }
  0x57   :  { %s2671_s13 = smov [#allocation11]   ;;  %s2672_s14 = smov [#allocation14]  }
  0x58   :  { %s72_s1 = sshll.u32 %s2671_s13, 4  ;;  %s100_s15 = sshll.u32 %s2672_s14, 4  ;;  %s73_s1 = int_to_ptr.vmem [resolvable:$true] %s72_s1  ;;  %s101_s15 = int_to_ptr.vmem [resolvable:$true] %s100_s15 }
  0x59   :  { %s2584_s7 = scalar_lea.hbm %s3200_s4, 2048 }
  0x5a   :  { %p2585_p12 = scmp.ne.s32.totalorder %s3200_s4, %s2584_s7  ;;  %p2588_p13 = scmp.lt.u32.totalorder %s2584_s7, %s3200_s4 }
  0x5c   :  { %p2590_p0 = pnand %p2588_p13, %p2585_p12 }
  0x5e   :  { %2593 = shalt.err (!%p2590_p0)
}
  0x5f   :  { %s2594_s2 = scalar_lea.vmem %s73_s1, 2048  ;;  %p2599_p2 = scmp.lt.s32.totalorder %s73_s1, %s73_s1 }
  0x60   :  { %p2595_p1 = scmp.ne.s32.totalorder %s73_s1, %s2594_s2  ;;  %p2600_p3 = scmp.lt.s32.totalorder %s2594_s2, %s2594_s2 }
  0x62   :  { %p2601_p4 = por %p2600_p3, %p2599_p2 }
  0x64   :  { %p2602_p5 = pnand %p2601_p4, %p2595_p1 }
  0x66   :  { %2605 = shalt.err (!%p2602_p5)
}
  0x67   :  { %78 = dma.hbm_to_vmem [thread:$0]  %s3200_s4, 2048, %s73_s1, [#allocation10], %s2669_s0, %s2669_s0, %s2670_s19  }
  0x68   :  { %s2606_s3 = scalar_lea.hbm %s3204_s8, 512 }
  0x69   :  { %p2607_p6 = scmp.ne.s32.totalorder %s3204_s8, %s2606_s3  ;;  %p2610_p7 = scmp.lt.u32.totalorder %s2606_s3, %s3204_s8 }
  0x6b   :  { %p2612_p8 = pnand %p2610_p7, %p2607_p6 }
  0x6d   :  { %2615 = shalt.err (!%p2612_p8)
}
  0x6e   :  { %s2616_s13 = scalar_lea.vmem %s101_s15, 512  ;;  %p2621_p10 = scmp.lt.s32.totalorder %s101_s15, %s101_s15 }
  0x6f   :  { %p2617_p9 = scmp.ne.s32.totalorder %s101_s15, %s2616_s13  ;;  %p2622_p11 = scmp.lt.s32.totalorder %s2616_s13, %s2616_s13 }
  0x71   :  { %p2623_p12 = por %p2622_p11, %p2621_p10 }
  0x73   :  { %p2624_p13 = pnand %p2623_p12, %p2617_p9 }
  0x75   :  { %2627 = shalt.err (!%p2624_p13)
}
  0x76   :  { %106 = dma.hbm_to_vmem [thread:$0]  %s3204_s8, 512, %s101_s15, [#allocation13], %s2662_s21, %s2662_s21, %s2663_s22  }
  0x77   :  { %2650 = dma.done.wait [#allocation4], 512  }
  0x78   :  { %2651 = vsyncadd [#allocation4], 4294966784 }
  0x79   :  { %2652 = dma.done.wait [#allocation7], 3072  }
  0x7a   :  { %2653 = vsyncadd [#allocation7], 4294964224 }
  0x7b   :  { %2654 = dma.done.wait [#allocation10], 6144  }
  0x7c   :  { %2655 = vsyncadd [#allocation10], 4294961152 }
  0x7d   :  { %2656 = dma.done.wait [#allocation13], 1024  }
  0x7e   :  { %2657 = vsyncadd [#allocation13], 4294966272  ;;  %v129_v0 = vld [vmem:[#allocation3] sm:$0xff]  ;;  %v130_v1 = vld [vmem:[#allocation3 + $0x8] sm:$0xff]  ;;  %v2673_v17 = vmov 0   ;;  %s2674_s14 = smov 112  }
  0x7f   :  { %v133_v2 = vmul.f32 %v129_v0, %v129_v0  ;;  %v2262_v3 = vld [vmem:[#allocation6 + $0x4] ss:$8 sps:$4 sm:$0xff]   ;;  %v2264_v4 = vld [vmem:[#allocation6] ss:$8 sps:$4 sm:$0xff]   ;;  %v2265_v5 = vld [vmem:[#allocation6 + $0x14] ss:$8 sps:$4 sm:$0xff]   ;;  %v134_v6 = vmul.f32 %v130_v1, %v130_v1  ;;  %303 = vmatprep.mubr.bf16.mxu0 %v2673_v17 }
  0x80   :  { %271 = vmatprep.subr.bf16.mxu0 %v2262_v3  ;;  %v2267_v7 = vld [vmem:[#allocation6 + $0x10] ss:$8 sps:$4 sm:$0xff]   ;;  %v2268_v8 = vld [vmem:[#allocation6 + $0x24] ss:$8 sps:$4 sm:$0xff]   ;;  %v2270_v9 = vld [vmem:[#allocation6 + $0x20] ss:$8 sps:$4 sm:$0xff]  }
  0x81   :  { %137 = vadd.xlane.f32.xlu0 %v133_v2  ;;  %272 = vmatpush1.bf16.msra.mxu0 %v2264_v4  ;;  %v2271_v10 = vld [vmem:[#allocation6 + $0x34] ss:$8 sps:$4 sm:$0xff]   ;;  %v2273_v11 = vld [vmem:[#allocation6 + $0x30] ss:$8 sps:$4 sm:$0xff]   ;;  %v2274_v12 = vld [vmem:[#allocation6 + $0x44] ss:$8 sps:$4 sm:$0xff]  }
  0x82   :  { %273 = vmatprep.subr.bf16.mxu0 %v2265_v5  ;;  %v2276_v13 = vld [vmem:[#allocation6 + $0x40] ss:$8 sps:$4 sm:$0xff]   ;;  %v2277_v14 = vld [vmem:[#allocation6 + $0x54] ss:$8 sps:$4 sm:$0xff]   ;;  %v2279_v15 = vld [vmem:[#allocation6 + $0x50] ss:$8 sps:$4 sm:$0xff]  }
  0x83   :  { %v2280_v16 = vld [vmem:[#allocation6 + $0x64] ss:$8 sps:$4 sm:$0xff]   ;;  %v2282_v18 = vld [vmem:[#allocation6 + $0x60] ss:$8 sps:$4 sm:$0xff]   ;;  %v2283_v19 = vld [vmem:[#allocation6 + $0x74] ss:$8 sps:$4 sm:$0xff]  }
  0x84   :  { %v2285_v20 = vld [vmem:[#allocation6 + $0x70] ss:$8 sps:$4 sm:$0xff]   ;;  %v2847_v30 = vld [vmem:[%s3201_s5] ss:$0 sm:$0xff]  ;;  %vm364_vm0 = vcmask 130048   ;;  %vm369_vm1 = vcmask 261120  }
  0x85   :  { %139 = vadd.xlane.f32.xlu0 %v134_v6  ;;  %274 = vmatpush1.bf16.msra.mxu0 %v2267_v7  ;;  %v2867_v40 = vld [vmem:[#allocation3 + $0x10] sm:$0xff]  ;;  %vm374_vm2 = vcmask 392192   ;;  %vm379_vm3 = vcmask 523264   ;;  %vm384_vm4 = vcmask 654336   ;;  %vm389_vm5 = vcmask 785408   ;;  %v328_v55 = vld [vmem:[#allocation14] sm:$0xff] }
  0x86   :  { %275 = vmatprep.subr.bf16.mxu0 %v2268_v8  ;;  %v135_v41 = vmul.f32 %v2867_v40, %v2867_v40  ;;  %vm394_vm6 = vcmask 916480   ;;  %v324_v59 = vld [vmem:[#allocation12] sm:$0xff]  ;;  %v325_v60 = vld [vmem:[#allocation12 + $0x8] sm:$0xff]  ;;  %s2675_s5 = smov 96   ;;  %vm704_vm11 = vcmask 523520   ;;  %vm888_vm12 = vcmask 785920  }
  0x87   :  { %v329_v61 = vld [vmem:[#allocation14 + $0x8] sm:$0xff]  ;;  %vm899_vm13 = vcmask 1048320  }
  0x89   :  { %276 = vmatpush1.bf16.msra.mxu0 %v2270_v9 }
  0x8a   :  { %277 = vmatprep.subr.bf16.mxu0 %v2271_v10 }
  0x8d   :  { %278 = vmatpush1.bf16.msra.mxu0 %v2273_v11 }
  0x8e   :  { %279 = vmatprep.subr.bf16.mxu0 %v2274_v12 }
  0x91   :  { %280 = vmatpush1.bf16.msra.mxu0 %v2276_v13 }
  0x92   :  { %281 = vmatprep.subr.bf16.mxu0 %v2277_v14 }
  0x95   :  { %282 = vmatpush1.bf16.msra.mxu0 %v2279_v15 }
  0x96   :  { %283 = vmatprep.subr.bf16.mxu0 %v2280_v16 }
  0x99   :  { %284 = vmatpush1.bf16.msra.mxu0 %v2282_v18 }
  0x9a   :  { %285 = vmatprep.subr.bf16.mxu0 %v2283_v19 }
  0x9d   :  { %286 = vmatpush1.bf16.msra.mxu0 %v2285_v20 }
 0x10e   :  { %v138_v21 = vpop.xlane.xlu0 %137 }
 0x10f   :  { %v146_v22 = vmul.f32 0.0078125, %v138_v21 }
 0x111   :  { %v150_v23 = vadd.f32 1e-06, %v146_v22 }
 0x112   :  { %v140_v24 = vpop.xlane.xlu0 %139 }
 0x113   :  { %2358 = vrsqrt.f32 %v150_v23  ;;  %v147_v25 = vmul.f32 0.0078125, %v140_v24 }
 0x115   :  { %v151_v26 = vadd.f32 1e-06, %v147_v25 }
 0x117   :  { %2360 = vrsqrt.f32 %v151_v26  ;;  %v132_v26 = vld [vmem:[#allocation3 + $0x18] sm:$0xff] }
 0x11d   :  { %v2359_v27 = vpop.eup %2358 }
 0x11e   :  { %v158_v28 = vmul.f32 %v2359_v27, %v129_v0  ;;  %v136_v27 = vmul.f32 %v132_v26, %v132_v26 }
 0x120   :  { %v169_v32 = vmul.f32 %v2847_v30, %v158_v28 }
 0x121   :  { %v2361_v29 = vpop.eup %2360 }
 0x122   :  { %v159_v31 = vmul.f32 %v2361_v29, %v130_v1 }
 0x124   :  { %v170_v33 = vmul.f32 %v2847_v30, %v159_v31 }
 0x126   :  { %v173_v34 = vpack.c.bf16 %v170_v33, %v169_v32 }
 0x128   :  { %304 = vmatmul.mubr.bf16.vlgmr.msra.gmra.mrb[0].mxu0 %v173_v34 }
 0x129   :  { %313 = vmatprep.mubr.bf16.mxu0 %v2673_v17 }
 0x1fb   :  { %v305_v35 = vpop.f32.mrb[0].mxu0 }
 0x1fc   :  { %352 = vrot.lane.b32.xlu0 %v305_v35, %s2665_s10  ;;  %340 = vrot.lane.b32.xlu1 %v305_v35, %s2674_s14  ;;  %v2854_v36 = vpop.f32.mrb[1].mxu0  ;;  %v332_v2 = vmul.f32 %v324_v59, %v305_v35 }
 0x1fd   :  { %v309_v37 = vpop.f32.mrb[2].mxu0  ;;  %v409_v19 = vmul.f32 %v324_v59, %v2854_v36 }
 0x1fe   :  { %v311_v38 = vpop.f32.mrb[3].mxu0  ;;  %v333_v3 = vmul.f32 %v325_v60, %v309_v37 }
 0x1ff   :  { %v2857_v39 = vpack.c.bf16 %v311_v38, %v2854_v36  ;;  %v410_v20 = vmul.f32 %v325_v60, %v311_v38 }
 0x200   :  { %342 = vrot.lane.b32.xlu1 %v309_v37, %s2674_s14 }
 0x204   :  { %354 = vrot.lane.b32.xlu1 %v309_v37, %s2665_s10 }
 0x208   :  { %417 = vrot.lane.b32.xlu1 %v2854_v36, %s2674_s14 }
 0x20c   :  { %429 = vrot.lane.b32.xlu1 %v2854_v36, %s2665_s10 }
 0x210   :  { %419 = vrot.lane.b32.xlu1 %v311_v38, %s2674_s14 }
 0x214   :  { %431 = vrot.lane.b32.xlu1 %v311_v38, %s2665_s10 }
 0x21b   :  { %141 = vadd.xlane.f32.xlu0 %v135_v41 }
 0x26e   :  { %v353_v42 = vpop.permute.xlu0 %352  ;;  %v341_v43 = vpop.permute.xlu1 %340 }
 0x26f   :  { %v365_v44 = vsel %vm364_vm0, %v341_v43, %v353_v42 }
 0x270   :  { %v370_v45 = vsel %vm369_vm1, %v365_v44, %v341_v43 }
 0x271   :  { %v375_v46 = vsel %vm374_vm2, %v370_v45, %v353_v42  ;;  %v465_v45 = vlaneseq }
 0x272   :  { %v380_v47 = vsel %vm379_vm3, %v375_v46, %v341_v43  ;;  %v343_v48 = vpop.permute.xlu1 %342 }
 0x273   :  { %v385_v49 = vsel %vm384_vm4, %v380_v47, %v353_v42  ;;  %v466_v46 = vshrl.u32 %v465_v45, 7 }
 0x274   :  { %v390_v50 = vsel %vm389_vm5, %v385_v49, %v341_v43 }
 0x275   :  { %v395_v56 = vsel %vm394_vm6, %v390_v50, %v353_v42  ;;  %v468_v47 = vadd.s32 16, %v466_v46  ;;  %v519_v50 = vand.u32 127, %v465_v45 }
 0x276   :  { %v355_v51 = vpop.permute.xlu1 %354  ;;  %v399_v0 = vmul.f32 %v395_v56, %v328_v55 }
 0x277   :  { %v366_v52 = vsel %vm364_vm0, %v343_v48, %v355_v51  ;;  %v488_v49 = vand.u32 15, %v468_v47 }
 0x278   :  { %v371_v53 = vsel %vm369_vm1, %v366_v52, %v343_v48  ;;  %v403_v7 = vadd.f32 %v399_v0, %v332_v2  ;;  %v469_v52 = vadd.s32 24, %v466_v46 }
 0x279   :  { %v376_v54 = vsel %vm374_vm2, %v371_v53, %v355_v51  ;;  %vm2904_vm7 = vcmp.le.s32.totalorder %v519_v50, %v488_v49 }
 0x27a   :  { %v381_v57 = vsel %vm379_vm3, %v376_v54, %v343_v48  ;;  %v418_v58 = vpop.permute.xlu1 %417 }
 0x27b   :  { %v386_v62 = vsel %vm384_vm4, %v381_v57, %v355_v51  ;;  %v495_v57 = vand.u32 15, %v469_v52 }
 0x27c   :  { %v391_v63 = vsel %vm389_vm5, %v386_v62, %v343_v48  ;;  %v467_v48 = vadd.s32 8, %v466_v46 }
 0x27d   :  { %v396_v1 = vsel %vm394_vm6, %v391_v63, %v355_v51  ;;  %v474_v51 = vand.u32 15, %v466_v46  ;;  %vm2924_vm10 = vcmp.le.s32.totalorder %v519_v50, %v495_v57 }
 0x27e   :  { %v400_v4 = vmul.f32 %v396_v1, %v329_v61  ;;  %v430_v5 = vpop.permute.xlu1 %429  ;;  %v481_v53 = vand.u32 15, %v467_v48 }
 0x27f   :  { %v441_v6 = vsel %vm364_vm0, %v418_v58, %v430_v5  ;;  %vm2908_vm8 = vcmp.le.s32.totalorder %v519_v50, %v474_v51 }
 0x280   :  { %v404_v8 = vadd.f32 %v400_v4, %v333_v3  ;;  %v445_v9 = vsel %vm369_vm1, %v441_v6, %v418_v58  ;;  %vm2914_vm9 = vcmp.le.s32.totalorder %v519_v50, %v481_v53 }
 0x281   :  { %v449_v12 = vsel %vm374_vm2, %v445_v9, %v430_v5  ;;  %v2938_v5 = vld [vmem:[#allocation12 + $0x10] sm:$0xff] }
 0x282   :  { %v420_v10 = vpop.permute.xlu1 %419  ;;  %v2887_v11 = vpack.c.bf16 %v404_v8, %v403_v7  ;;  %v453_v15 = vmul.f32 %v449_v12, %v328_v55  ;;  %v2944_v8 = vld [vmem:[#allocation12 + $0x18] sm:$0xff] }
 0x284   :  { %2174 = vmatprep.mubr.msk.bf16.mxu1 %vm369_vm1, %v2887_v11  ;;  %525 = vrot.lane.b32.xlu1 %v2887_v11, %s2675_s5  ;;  %v457_v22 = vadd.f32 %v453_v15, %v409_v19 }
 0x286   :  { %v432_v13 = vpop.permute.xlu1 %431 }
 0x287   :  { %v442_v14 = vsel %vm364_vm0, %v420_v10, %v432_v13 }
 0x288   :  { %v446_v16 = vsel %vm369_vm1, %v442_v14, %v420_v10 }
 0x289   :  { %v450_v18 = vsel %vm374_vm2, %v446_v16, %v432_v13 }
 0x28a   :  { %v454_v21 = vmul.f32 %v450_v18, %v329_v61 }
 0x28c   :  { %v458_v23 = vadd.f32 %v454_v21, %v410_v20 }
 0x28e   :  { %v461_v24 = vpack.c.bf16 %v458_v23, %v457_v22 }
 0x290   :  { %2240 = vmatprep.subr.msk.bf16.mxu1 %vm369_vm1, %v461_v24  ;;  %v534_v25 = vsel %vm369_vm1, %v461_v24, 0 }
 0x291   :  { %2173 = vmatpush3.bf16.xpose.msra.mxu1 %v534_v25 }
 0x2a8   :  { %143 = vadd.xlane.f32.xlu1 %v136_v27  ;;  %v142_v29 = vpop.xlane.xlu0 %141 }
 0x2a9   :  { %v148_v31 = vmul.f32 0.0078125, %v142_v29 }
 0x2ab   :  { %v152_v32 = vadd.f32 1e-06, %v148_v31 }
 0x2ad   :  { %2362 = vrsqrt.f32 %v152_v32 }
 0x2b7   :  { %v2363_v36 = vpop.eup %2362 }
 0x2b8   :  { %v160_v37 = vmul.f32 %v2363_v36, %v2867_v40 }
 0x2ba   :  { %v171_v42 = vmul.f32 %v2847_v30, %v160_v37 }
 0x2f6   :  { %v526_v28 = vpop.permute.xlu1 %525 }
 0x2f7   :  { %2175 = vmatmul.mubr.msk.bf16.vlgmr.msra.gmra.mrb[0].mxu1 %vm369_vm1, %v526_v28 }
 0x335   :  { %v144_v33 = vpop.xlane.xlu1 %143 }
 0x336   :  { %v149_v34 = vmul.f32 0.0078125, %v144_v33 }
 0x338   :  { %v153_v35 = vadd.f32 1e-06, %v149_v34 }
 0x33a   :  { %2364 = vrsqrt.f32 %v153_v35 }
 0x344   :  { %v2365_v38 = vpop.eup %2364 }
 0x345   :  { %v161_v41 = vmul.f32 %v2365_v38, %v132_v26 }
 0x347   :  { %v172_v43 = vmul.f32 %v2847_v30, %v161_v41 }
 0x349   :  { %v174_v44 = vpack.c.bf16 %v172_v43, %v171_v42 }
 0x34b   :  { %314 = vmatmul.mubr.bf16.gmra.mrb[4].mxu0 %v174_v44 }
 0x3ca   :  { %v2176_v30 = vpop.f32.mrb[0].mxu1 }
 0x3cb   :  { %v587_v55 = vsel %vm2904_vm7, %v2176_v30, -1e+30  ;;  %v570_v56 = vpop.f32.mrb[1].mxu1  ;;  %v330_v30 = vld [vmem:[#allocation14 + $0x10] sm:$0xff] }
 0x3cc   :  { %v585_v59 = vsel %vm2908_vm8, %v570_v56, -1e+30  ;;  %v2177_v60 = vpop.f32.mrb[2].mxu1  ;;  %v595_v61 = vsel %vm364_vm0, %v587_v55, -inf }
 0x3cd   :  { %596 = vmax.xlane.f32.xlu1 %v595_v61  ;;  %v573_v62 = vpop.f32.mrb[3].mxu1  ;;  %v589_v63 = vsel %vm364_vm0, %v585_v59, -inf  ;;  %v588_v3 = vsel %vm2924_vm10, %v2177_v60, -1e+30  ;;  %v331_v61 = vld [vmem:[#allocation14 + $0x18] sm:$0xff] }
 0x3ce   :  { %v586_v0 = vsel %vm2914_vm9, %v573_v62, -1e+30  ;;  %590 = vmax.xlane.f32.xlu0 %v589_v63  ;;  %v598_v4 = vsel %vm364_vm0, %v588_v3, -inf }
 0x3cf   :  { %v592_v2 = vsel %vm364_vm0, %v586_v0, -inf }
 0x3d2   :  { %593 = vmax.xlane.f32.xlu0 %v592_v2 }
 0x3d6   :  { %599 = vmax.xlane.f32.xlu0 %v598_v4 }
 0x3de   :  { %628 = vrot.lane.b32.xlu1 %v2857_v39, %s2669_s0 }
 0x3e2   :  { %707 = vrot.lane.b32.xlu1 %v2887_v11, %s2669_s0 }
 0x3e6   :  { %709 = vrot.lane.b32.xlu1 %v526_v28, %s2669_s0 }
 0x3ec   :  { %712 = vrot.lane.b32.xlu0 %v461_v24, %s2675_s5 }
 0x41e   :  { %v2940_v6 = vpop.f32.mrb[4].mxu0 }
 0x41f   :  { %v317_v7 = vpop.f32.mrb[5].mxu0  ;;  %344 = vrot.lane.b32.xlu0 %v2940_v6, %s2674_s14  ;;  %v334_v4 = vmul.f32 %v2938_v5, %v2940_v6 }
 0x420   :  { %v2947_v9 = vmul.f32 %v2938_v5, %v317_v7  ;;  %v2949_v10 = vpop.f32.mrb[6].mxu0 }
 0x421   :  { %346 = vrot.lane.b32.xlu1 %v2949_v10, %s2674_s14  ;;  %v321_v11 = vpop.f32.mrb[7].mxu0 }
 0x422   :  { %v2954_v12 = vmul.f32 %v2944_v8, %v321_v11  ;;  %v2956_v13 = vpack.c.bf16 %v321_v11, %v317_v7 }
 0x423   :  { %356 = vrot.lane.b32.xlu0 %v2940_v6, %s2665_s10 }
 0x425   :  { %358 = vrot.lane.b32.xlu1 %v2949_v10, %s2665_s10 }
 0x427   :  { %421 = vrot.lane.b32.xlu0 %v317_v7, %s2674_s14 }
 0x429   :  { %423 = vrot.lane.b32.xlu1 %v321_v11, %s2674_s14 }
 0x42b   :  { %433 = vrot.lane.b32.xlu0 %v317_v7, %s2665_s10  ;;  %v335_v7 = vmul.f32 %v2944_v8, %v2949_v10 }
 0x42d   :  { %435 = vrot.lane.b32.xlu1 %v321_v11, %s2665_s10  ;;  %s2676_s10 = smov 32  }
 0x45a   :  { %v597_v14 = vpop.xlane.xlu1 %596 }
 0x45b   :  { %v591_v15 = vpop.xlane.xlu0 %590  ;;  %v603_v19 = vsub.f32 %v587_v55, %v597_v14 }
 0x45c   :  { %v601_v16 = vsub.f32 %v585_v59, %v591_v15 }
 0x45d   :  { %v609_v24 = vmul.f32 1.442695, %v603_v19 }
 0x45e   :  { %v629_v18 = vpop.permute.xlu1 %628  ;;  %v605_v20 = vmul.f32 1.442695, %v601_v16 }
 0x45f   :  { %2178 = vmatprep.subr.bf16.mxu1 %v629_v18  ;;  %v594_v21 = vpop.xlane.xlu0 %593 }
 0x460   :  { %v602_v22 = vsub.f32 %v586_v0, %v594_v21  ;;  %2179 = vmatpush3.bf16.msra.mxu1 %v629_v18  ;;  %2366 = vpow2.f32 %v605_v20 }
 0x462   :  { %v607_v23 = vmul.f32 1.442695, %v602_v22  ;;  %v708_v36 = vpop.permute.xlu1 %707 }
 0x463   :  { %v600_v25 = vpop.xlane.xlu0 %599 }
 0x464   :  { %2368 = vpow2.f32 %v607_v23  ;;  %v604_v26 = vsub.f32 %v588_v3, %v600_v25 }
 0x465   :  { %2370 = vpow2.f32 %v609_v24 }
 0x466   :  { %v611_v27 = vmul.f32 1.442695, %v604_v26  ;;  %v710_v38 = vpop.permute.xlu1 %709 }
 0x467   :  { %v713_v28 = vpop.permute.xlu0 %712 }
 0x468   :  { %2372 = vpow2.f32 %v611_v27  ;;  %2241 = vmatprep.subr.msk.bf16.mxu1 %vm369_vm1, %v713_v28  ;;  %v721_v37 = vsel %vm369_vm1, %v713_v28, 0 }
 0x46a   :  { %v2967_v29 = vpop.eup %2366 }
 0x46e   :  { %v2969_v31 = vpop.eup %2368 }
 0x46f   :  { %v625_v32 = vpack.c.bf16 %v2969_v31, %v2967_v29  ;;  %v2973_v33 = vpop.eup %2370 }
 0x470   :  { %v619_v58 = vsel %vm364_vm0, %v2973_v33, 0.0 }
 0x471   :  { %2180 = vmatprep.mubr.msk.bf16.mxu1 %vm364_vm0, %v625_v32 }
 0x472   :  { %v2976_v34 = vpop.eup %2372 }
 0x473   :  { %v626_v35 = vpack.c.bf16 %v2976_v34, %v2973_v33  ;;  %v622_v40 = vsel %vm364_vm0, %v2976_v34, 0.0 }
 0x475   :  { %2181 = vmatmul.mubr.msk.bf16.vlgmr.msra.gmra.mrb[4].mxu1 %vm364_vm0, %v626_v35 }
 0x476   :  { %2185 = vmatpush3.bf16.xpose.msra.mxu1 %v721_v37  ;;  %2186 = vmatprep.mubr.msk.bf16.mxu1 %vm369_vm1, %v708_v36 }
 0x47d   :  { %2187 = vmatmul.mubr.msk.bf16.vlgmr.msra.gmra.mrb[8].mxu1 %vm369_vm1, %v710_v38 }
 0x491   :  { %v345_v41 = vpop.permute.xlu0 %344 }
 0x493   :  { %v347_v42 = vpop.permute.xlu1 %346 }
 0x495   :  { %v357_v43 = vpop.permute.xlu0 %356 }
 0x496   :  { %v367_v44 = vsel %vm364_vm0, %v345_v41, %v357_v43 }
 0x497   :  { %v372_v45 = vsel %vm369_vm1, %v367_v44, %v345_v41  ;;  %v359_v46 = vpop.permute.xlu1 %358 }
 0x498   :  { %v377_v47 = vsel %vm374_vm2, %v372_v45, %v357_v43  ;;  %v368_v48 = vsel %vm364_vm0, %v347_v42, %v359_v46 }
 0x499   :  { %v382_v49 = vsel %vm379_vm3, %v377_v47, %v345_v41  ;;  %v373_v50 = vsel %vm369_vm1, %v368_v48, %v347_v42  ;;  %v422_v51 = vpop.permute.xlu0 %421 }
 0x49a   :  { %v387_v52 = vsel %vm384_vm4, %v382_v49, %v357_v43  ;;  %v378_v53 = vsel %vm374_vm2, %v373_v50, %v359_v46 }
 0x49b   :  { %v383_v55 = vsel %vm379_vm3, %v378_v53, %v347_v42  ;;  %v424_v56 = vpop.permute.xlu1 %423  ;;  %v392_v57 = vsel %vm389_vm5, %v387_v52, %v345_v41 }
 0x49c   :  { %v388_v59 = vsel %vm384_vm4, %v383_v55, %v359_v46  ;;  %v397_v60 = vsel %vm394_vm6, %v392_v57, %v357_v43 }
 0x49d   :  { %v401_v62 = vmul.f32 %v397_v60, %v330_v30  ;;  %v434_v63 = vpop.permute.xlu0 %433  ;;  %v393_v0 = vsel %vm389_vm5, %v388_v59, %v347_v42 }
 0x49e   :  { %v443_v2 = vsel %vm364_vm0, %v422_v51, %v434_v63  ;;  %v398_v3 = vsel %vm394_vm6, %v393_v0, %v359_v46 }
 0x49f   :  { %v447_v11 = vsel %vm369_vm1, %v443_v2, %v422_v51  ;;  %v402_v14 = vmul.f32 %v398_v3, %v331_v61  ;;  %v436_v15 = vpop.permute.xlu1 %435  ;;  %v405_v21 = vadd.f32 %v401_v62, %v334_v4 }
 0x4a0   :  { %v451_v16 = vsel %vm374_vm2, %v447_v11, %v434_v63  ;;  %v444_v18 = vsel %vm364_vm0, %v424_v56, %v436_v15 }
 0x4a1   :  { %v455_v19 = vmul.f32 %v451_v16, %v330_v30  ;;  %v448_v20 = vsel %vm369_vm1, %v444_v18, %v424_v56  ;;  %v406_v22 = vadd.f32 %v402_v14, %v335_v7 }
 0x4a2   :  { %v452_v23 = vsel %vm374_vm2, %v448_v20, %v436_v15 }
 0x4a3   :  { %v459_v5 = vadd.f32 %v455_v19, %v2947_v9  ;;  %v456_v6 = vmul.f32 %v452_v23, %v331_v61  ;;  %v408_v24 = vpack.c.bf16 %v406_v22, %v405_v21 }
 0x4a5   :  { %v460_v8 = vadd.f32 %v456_v6, %v2954_v12  ;;  %903 = vrot.lane.b32.xlu0 %v408_v24, %s2675_s5 }
 0x4a7   :  { %v462_v10 = vpack.c.bf16 %v460_v8, %v459_v5 }
 0x4a9   :  { %v912_v3 = vsel %vm369_vm1, %v462_v10, 0 }
 0x517   :  { %v904_v46 = vpop.permute.xlu0 %903 }
 0x548   :  { %v3011_v25 = vpop.f32.mrb[4].mxu1 }
 0x549   :  { %v3013_v26 = vpop.f32.mrb[5].mxu1 }
 0x54a   :  { %v3015_v27 = vpop.f32.mrb[6].mxu1 }
 0x54b   :  { %v3017_v28 = vpop.f32.mrb[7].mxu1 }
 0x550   :  { %v2188_v32 = vpop.f32.mrb[8].mxu1 }
 0x551   :  { %v774_v35 = vsel %vm2904_vm7, %v2188_v32, -1e+30  ;;  %v757_v9 = vpop.f32.mrb[9].mxu1 }
 0x552   :  { %v772_v36 = vsel %vm2908_vm8, %v757_v9, -1e+30  ;;  %v2189_v12 = vpop.f32.mrb[10].mxu1  ;;  %v782_v37 = vsel %vm364_vm0, %v774_v35, -inf }
 0x553   :  { %v760_v38 = vpop.f32.mrb[11].mxu1  ;;  %783 = vmax.xlane.f32.xlu0 %v782_v37  ;;  %v776_v41 = vsel %vm364_vm0, %v772_v36, -inf  ;;  %v775_v42 = vsel %vm2924_vm10, %v2189_v12, -1e+30 }
 0x554   :  { %v773_v43 = vsel %vm2914_vm9, %v760_v38, -1e+30  ;;  %777 = vmax.xlane.f32.xlu1 %v776_v41  ;;  %v785_v45 = vsel %vm364_vm0, %v775_v42, -inf }
 0x555   :  { %v779_v44 = vsel %vm364_vm0, %v773_v43, -inf }
 0x557   :  { %780 = vmax.xlane.f32.xlu0 %v779_v44 }
 0x558   :  { %786 = vmax.xlane.f32.xlu1 %v785_v45 }
 0x569   :  { %1089 = vrot.lane.b32.xlu1 %v462_v10, %s2675_s5 }
 0x56d   :  { %814 = vrot.lane.b32.xlu0 %v2857_v39, %s2676_s10  ;;  %1084 = vrot.lane.b32.xlu1 %v408_v24, %s2669_s0 }
 0x571   :  { %1086 = vrot.lane.b32.xlu0 %v904_v46, %s2669_s0 }
 0x5e0   :  { %v784_v47 = vpop.xlane.xlu0 %783 }
 0x5e1   :  { %v790_v48 = vsub.f32 %v774_v35, %v784_v47  ;;  %v778_v49 = vpop.xlane.xlu1 %777 }
 0x5e2   :  { %v788_v50 = vsub.f32 %v772_v36, %v778_v49 }
 0x5e3   :  { %v796_v51 = vmul.f32 1.442695, %v790_v48 }
 0x5e4   :  { %v792_v52 = vmul.f32 1.442695, %v788_v50  ;;  %v781_v53 = vpop.xlane.xlu0 %780 }
 0x5e5   :  { %v789_v30 = vsub.f32 %v773_v43, %v781_v53  ;;  %v787_v55 = vpop.xlane.xlu1 %786  ;;  %2374 = vpow2.f32 %v796_v51 }
 0x5e6   :  { %v791_v56 = vsub.f32 %v775_v42, %v787_v55  ;;  %2376 = vpow2.f32 %v792_v52 }
 0x5e7   :  { %v794_v57 = vmul.f32 1.442695, %v789_v30 }
 0x5e8   :  { %v798_v59 = vmul.f32 1.442695, %v791_v56  ;;  %v815_v39 = vpop.permute.xlu0 %814 }
 0x5e9   :  { %2378 = vpow2.f32 %v794_v57  ;;  %2190 = vmatprep.subr.bf16.mxu1 %v815_v39  ;;  %v1090_v4 = vpop.permute.xlu1 %1089 }
 0x5ea   :  { %2380 = vpow2.f32 %v798_v59  ;;  %2191 = vmatpush3.bf16.msra.mxu1 %v815_v39  ;;  %v1098_v7 = vsel %vm369_vm1, %v1090_v4, 0 }
 0x5eb   :  { %2242 = vmatprep.subr.msk.bf16.mxu1 %vm369_vm1, %v462_v10 }
 0x5ec   :  { %v1087_v14 = vpop.permute.xlu0 %1086 }
 0x5ed   :  { %v1085_v11 = vpop.permute.xlu1 %1084 }
 0x5ef   :  { %v3037_v60 = vpop.eup %2374 }
 0x5f0   :  { %v2377_v61 = vpop.eup %2376  ;;  %v806_v49 = vsel %vm364_vm0, %v3037_v60, 0.0 }
 0x5f1   :  { %v800_v1 = vsel %vm364_vm0, %v2377_v61, 0.0 }
 0x5f3   :  { %v2379_v62 = vpop.eup %2378 }
 0x5f4   :  { %v3039_v63 = vpop.eup %2380  ;;  %v812_v0 = vpack.c.bf16 %v2379_v62, %v2377_v61  ;;  %v803_v48 = vsel %vm364_vm0, %v2379_v62, 0.0 }
 0x5f5   :  { %v813_v2 = vpack.c.bf16 %v3039_v63, %v3037_v60 }
 0x5f6   :  { %2192 = vmatprep.mubr.msk.bf16.mxu1 %vm364_vm0, %v812_v0 }
 0x5f7   :  { %2193 = vmatmul.mubr.msk.bf16.vlgmr.msra.gmra.mrb[12].mxu1 %vm364_vm0, %v813_v2 }
 0x5f8   :  { %2197 = vmatpush3.bf16.xpose.msra.mxu1 %v912_v3  ;;  %2198 = vmatprep.mubr.msk.bf16.mxu1 %vm369_vm1, %v408_v24 }
 0x5f9   :  { %2243 = vmatprep.subr.msk.bf16.mxu1 %vm369_vm1, %v1090_v4 }
 0x5ff   :  { %2199 = vmatmul.mubr.msk.bf16.vlgmr.msra.gmra.mrb[16].mxu1 %vm369_vm1, %v904_v46 }
 0x600   :  { %2209 = vmatpush3.bf16.xpose.msra.mxu1 %v1098_v7  ;;  %2210 = vmatprep.mubr.msk.bf16.mxu1 %vm369_vm1, %v1085_v11 }
 0x607   :  { %2211 = vmatmul.mubr.msk.bf16.vlgmr.msra.gmra.mrb[20].mxu1 %vm369_vm1, %v1087_v14 }
 0x6ca   :  { %v3052_v15 = vpop.f32.mrb[12].mxu1 }
 0x6cb   :  { %v3054_v16 = vpop.f32.mrb[13].mxu1 }
 0x6cc   :  { %v3056_v18 = vpop.f32.mrb[14].mxu1 }
 0x6cd   :  { %v3058_v19 = vpop.f32.mrb[15].mxu1 }
 0x6d2   :  { %v2200_v20 = vpop.f32.mrb[16].mxu1 }
 0x6d3   :  { %v965_v21 = vsel %vm2904_vm7, %v2200_v20, -1e+30  ;;  %v948_v22 = vpop.f32.mrb[17].mxu1 }
 0x6d4   :  { %v963_v23 = vsel %vm2908_vm8, %v948_v22, -1e+30  ;;  %v2201_v5 = vpop.f32.mrb[18].mxu1  ;;  %v973_v6 = vsel %vm364_vm0, %v965_v21, -inf }
 0x6d5   :  { %974 = vmax.xlane.f32.xlu0 %v973_v6  ;;  %v951_v24 = vpop.f32.mrb[19].mxu1  ;;  %v967_v8 = vsel %vm364_vm0, %v963_v23, -inf  ;;  %v966_v10 = vsel %vm2924_vm10, %v2201_v5, -1e+30 }
 0x6d6   :  { %v964_v32 = vsel %vm2914_vm9, %v951_v24, -1e+30  ;;  %968 = vmax.xlane.f32.xlu1 %v967_v8  ;;  %v976_v9 = vsel %vm364_vm0, %v966_v10, -inf }
 0x6d7   :  { %v970_v35 = vsel %vm364_vm0, %v964_v32, -inf }
 0x6d9   :  { %971 = vmax.xlane.f32.xlu0 %v970_v35 }
 0x6da   :  { %977 = vmax.xlane.f32.xlu1 %v976_v9  ;;  %v2212_v36 = vpop.f32.mrb[20].mxu1 }
 0x6db   :  { %v1151_v12 = vsel %vm2904_vm7, %v2212_v36, -1e+30  ;;  %v1134_v37 = vpop.f32.mrb[21].mxu1 }
 0x6dc   :  { %v2213_v38 = vpop.f32.mrb[22].mxu1  ;;  %v1159_v41 = vsel %vm364_vm0, %v1151_v12, -inf  ;;  %v1149_v42 = vsel %vm2908_vm8, %v1134_v37, -1e+30 }
 0x6dd   :  { %v1152_v43 = vsel %vm2924_vm10, %v2213_v38, -1e+30  ;;  %1160 = vmax.xlane.f32.xlu0 %v1159_v41  ;;  %v1137_v44 = vpop.f32.mrb[23].mxu1  ;;  %v1153_v54 = vsel %vm364_vm0, %v1149_v42, -inf }
 0x6de   :  { %v1162_v45 = vsel %vm364_vm0, %v1152_v43, -inf  ;;  %v1150_v46 = vsel %vm2914_vm9, %v1137_v44, -1e+30 }
 0x6df   :  { %1163 = vmax.xlane.f32.xlu1 %v1162_v45  ;;  %v1156_v47 = vsel %vm364_vm0, %v1150_v46, -inf }
 0x6e1   :  { %1154 = vmax.xlane.f32.xlu0 %v1153_v54  ;;  %v616_v54 = vsel %vm364_vm0, %v2969_v31, 0.0 }
 0x6e3   :  { %1157 = vmax.xlane.f32.xlu1 %v1156_v47 }
 0x6f4   :  { %1191 = vrot.lane.b32.xlu1 %v2956_v13, %s2676_s10 }
 0x6f7   :  { %1006 = vrot.lane.b32.xlu0 %v2956_v13, %s2669_s0  ;;  %v809_v13 = vsel %vm364_vm0, %v3039_v63, 0.0 }
 0x716   :  { %623 = vadd.xlane.f32.xlu0 %v622_v40 }
 0x718   :  { %620 = vadd.xlane.f32.xlu1 %v619_v58 }
 0x71a   :  { %801 = vadd.xlane.f32.xlu0 %v800_v1 }
 0x71c   :  { %804 = vadd.xlane.f32.xlu1 %v803_v48 }
 0x71e   :  { %807 = vadd.xlane.f32.xlu0 %v806_v49 }
 0x720   :  { %810 = vadd.xlane.f32.xlu1 %v809_v13 }
 0x762   :  { %v975_v34 = vpop.xlane.xlu0 %974 }
 0x763   :  { %v981_v50 = vsub.f32 %v965_v21, %v975_v34  ;;  %v969_v51 = vpop.xlane.xlu1 %968 }
 0x764   :  { %v979_v52 = vsub.f32 %v963_v23, %v969_v51 }
 0x765   :  { %v987_v33 = vmul.f32 1.442695, %v981_v50 }
 0x766   :  { %v983_v53 = vmul.f32 1.442695, %v979_v52  ;;  %v972_v30 = vpop.xlane.xlu0 %971 }
 0x767   :  { %2382 = vpow2.f32 %v987_v33  ;;  %v980_v55 = vsub.f32 %v964_v32, %v972_v30  ;;  %v978_v56 = vpop.xlane.xlu1 %977 }
 0x768   :  { %v982_v57 = vsub.f32 %v966_v10, %v978_v56  ;;  %2384 = vpow2.f32 %v983_v53 }
 0x769   :  { %v985_v59 = vmul.f32 1.442695, %v980_v55 }
 0x76a   :  { %v989_v39 = vmul.f32 1.442695, %v982_v57  ;;  %v1161_v60 = vpop.xlane.xlu0 %1160  ;;  %v2286_v57 = vld [vmem:[#allocation8] sm:$0xff]  }
 0x76b   :  { %2386 = vpow2.f32 %v985_v59  ;;  %v1167_v61 = vsub.f32 %v1151_v12, %v1161_v60  ;;  %v2287_v59 = vld [vmem:[#allocation8 + $0x8] sm:$0xff]   ;;  %2220 = vmatprep.subr.bf16.mxu1 %v2286_v57 }
 0x76c   :  { %2388 = vpow2.f32 %v989_v39  ;;  %v1164_v62 = vpop.xlane.xlu1 %1163  ;;  %2221 = vmatpush3.bf16.msra.mxu1 %v2286_v57 }
 0x76d   :  { %v1168_v63 = vsub.f32 %v1152_v43, %v1164_v62  ;;  %v1173_v0 = vmul.f32 1.442695, %v1167_v61  ;;  %2222 = vmatprep.subr.bf16.mxu1 %v2287_v59 }
 0x76e   :  { %v1155_v2 = vpop.xlane.xlu0 %1154 }
 0x76f   :  { %v1165_v3 = vsub.f32 %v1149_v42, %v1155_v2  ;;  %v1175_v4 = vmul.f32 1.442695, %v1168_v63  ;;  %2390 = vpow2.f32 %v1173_v0 }
 0x770   :  { %v1158_v7 = vpop.xlane.xlu1 %1157  ;;  %2223 = vmatpush3.bf16.msra.mxu1 %v2287_v59  ;;  %v2294_v59 = vld [vmem:[#allocation9] ss:$16 sps:$4 sm:$0xff]  }
 0x771   :  { %v2383_v11 = vpop.eup %2382  ;;  %v1169_v14 = vmul.f32 1.442695, %v1165_v3  ;;  %v1166_v20 = vsub.f32 %v1150_v46, %v1158_v7  ;;  %v613_v46 = vsel %vm364_vm0, %v2967_v29, 0.0 }
 0x772   :  { %v1007_v21 = vpop.permute.xlu0 %1006  ;;  %v997_v22 = vsel %vm364_vm0, %v2383_v11, 0.0  ;;  %v2385_v5 = vpop.eup %2384 }
 0x773   :  { %2392 = vpow2.f32 %v1169_v14  ;;  %v1171_v23 = vmul.f32 1.442695, %v1166_v20  ;;  %998 = vadd.xlane.f32.xlu0 %v997_v22  ;;  %2202 = vmatprep.subr.bf16.mxu0 %v1007_v21  ;;  %v991_v47 = vsel %vm364_vm0, %v2385_v5, 0.0 }
 0x774   :  { %2394 = vpow2.f32 %v1175_v4  ;;  %v1192_v6 = vpop.permute.xlu1 %1191  ;;  %2203 = vmatpush3.bf16.msra.mxu0 %v1007_v21 }
 0x775   :  { %v2387_v24 = vpop.eup %2386  ;;  %2396 = vpow2.f32 %v1171_v23  ;;  %2214 = vmatprep.subr.bf16.mxu0 %v1192_v6 }
 0x776   :  { %v2389_v8 = vpop.eup %2388  ;;  %v1003_v10 = vpack.c.bf16 %v2387_v24, %v2385_v5  ;;  %v994_v40 = vsel %vm364_vm0, %v2387_v24, 0.0  ;;  %v2289_v24 = vld [vmem:[#allocation8 + $0x18] sm:$0xff]  }
 0x777   :  { %v1004_v32 = vpack.c.bf16 %v2389_v8, %v2383_v11  ;;  %v1000_v35 = vsel %vm364_vm0, %v2389_v8, 0.0 }
 0x778   :  { %1001 = vadd.xlane.f32.xlu1 %v1000_v35  ;;  %2204 = vmatprep.mubr.msk.bf16.mxu0 %vm364_vm0, %v1003_v10 }
 0x779   :  { %2205 = vmatmul.mubr.msk.bf16.vlgmr.msra.gmra.mrb[8].mxu0 %vm364_vm0, %v1004_v32  ;;  %v2391_v9 = vpop.eup %2390  ;;  %v2290_v32 = vld [vmem:[#allocation8 + $0x20] sm:$0xff]  }
 0x77a   :  { %2215 = vmatpush3.bf16.msra.mxu0 %v1192_v6  ;;  %v1183_v44 = vsel %vm364_vm0, %v2391_v9, 0.0  ;;  %v2288_v6 = vld [vmem:[#allocation8 + $0x10] sm:$0xff]  }
 0x77b   :  { %2224 = vmatprep.subr.bf16.mxu1 %v2288_v6 }
 0x77c   :  { %2225 = vmatpush3.bf16.msra.mxu1 %v2288_v6 }
 0x77d   :  { %v2393_v36 = vpop.eup %2392  ;;  %2226 = vmatprep.subr.bf16.mxu1 %v2289_v24 }
 0x77e   :  { %v2395_v12 = vpop.eup %2394  ;;  %v1177_v37 = vsel %vm364_vm0, %v2393_v36, 0.0 }
 0x77f   :  { %v2397_v38 = vpop.eup %2396  ;;  %1178 = vadd.xlane.f32.xlu0 %v1177_v37  ;;  %v1190_v43 = vpack.c.bf16 %v2395_v12, %v2391_v9  ;;  %v1186_v45 = vsel %vm364_vm0, %v2395_v12, 0.0 }
 0x780   :  { %v1180_v41 = vsel %vm364_vm0, %v2397_v38, 0.0  ;;  %v1189_v42 = vpack.c.bf16 %v2397_v38, %v2393_v36  ;;  %2227 = vmatpush3.bf16.msra.mxu1 %v2289_v24 }
 0x781   :  { %1181 = vadd.xlane.f32.xlu1 %v1180_v41  ;;  %2228 = vmatprep.subr.bf16.mxu1 %v2290_v32 }
 0x782   :  { %2216 = vmatprep.mubr.msk.bf16.mxu0 %vm364_vm0, %v1189_v42 }
 0x783   :  { %1184 = vadd.xlane.f32.xlu0 %v1183_v44  ;;  %2217 = vmatmul.mubr.msk.bf16.vlgmr.msra.gmra.mrb[12].mxu0 %vm364_vm0, %v1190_v43 }
 0x784   :  { %1665 = vmatprep.mubr.bf16.mxu0 %v2673_v17  ;;  %2229 = vmatpush3.bf16.msra.mxu1 %v2290_v32  ;;  %v2314_v32 = vld [vmem:[#allocation9 + $0x64] ss:$16 sps:$4 sm:$0xff]  }
 0x785   :  { %1187 = vadd.xlane.f32.xlu1 %v1186_v45  ;;  %v2291_v45 = vld [vmem:[#allocation8 + $0x28] sm:$0xff]  }
 0x786   :  { %2230 = vmatprep.subr.bf16.mxu1 %v2291_v45 }
 0x787   :  { %614 = vadd.xlane.f32.xlu0 %v613_v46  ;;  %v2292_v46 = vld [vmem:[#allocation8 + $0x30] sm:$0xff]  }
 0x788   :  { %2231 = vmatpush3.bf16.msra.mxu1 %v2291_v45  ;;  %v2329_v45 = vld [vmem:[#allocation9 + $0xac] ss:$16 sps:$4 sm:$0xff]  }
 0x789   :  { %617 = vadd.xlane.f32.xlu1 %v616_v54  ;;  %v2293_v54 = vld [vmem:[#allocation8 + $0x38] sm:$0xff]   ;;  %2232 = vmatprep.subr.bf16.mxu1 %v2292_v46 }
 0x78b   :  { %992 = vadd.xlane.f32.xlu0 %v991_v47 }
 0x78c   :  { %2233 = vmatpush3.bf16.msra.mxu1 %v2292_v46  ;;  %v2332_v46 = vld [vmem:[#allocation9 + $0xc4] ss:$16 sps:$4 sm:$0xff]  }
 0x78d   :  { %995 = vadd.xlane.f32.xlu1 %v994_v40  ;;  %2234 = vmatprep.subr.bf16.mxu1 %v2293_v54 }
 0x790   :  { %2235 = vmatpush3.bf16.msra.mxu1 %v2293_v54  ;;  %v2335_v54 = vld [vmem:[#allocation9 + $0xcc] ss:$16 sps:$4 sm:$0xff]  }
 0x7a3   :  { %v624_v58 = vpop.xlane.xlu0 %623 }
 0x7a4   :  { %2398 = vrcp.f32 %v624_v58 }
 0x7a5   :  { %v621_v1 = vpop.xlane.xlu1 %620 }
 0x7a6   :  { %2400 = vrcp.f32 %v621_v1 }
 0x7a7   :  { %v802_v48 = vpop.xlane.xlu0 %801 }
 0x7a8   :  { %2402 = vrcp.f32 %v802_v48 }
 0x7a9   :  { %v805_v49 = vpop.xlane.xlu1 %804 }
 0x7aa   :  { %2404 = vrcp.f32 %v805_v49 }
 0x7ab   :  { %v808_v29 = vpop.xlane.xlu0 %807 }
 0x7ac   :  { %2406 = vrcp.f32 %v808_v29 }
 0x7ad   :  { %v811_v13 = vpop.xlane.xlu1 %810 }
 0x7ae   :  { %v2399_v34 = vpop.eup %2398  ;;  %2408 = vrcp.f32 %v811_v13 }
 0x7af   :  { %v693_v31 = vmul.f32 %v2399_v34, %v3015_v27 }
 0x7b0   :  { %v2401_v50 = vpop.eup %2400 }
 0x7b1   :  { %700 = vrot.lane.b32.xlu1 %v693_v31, %s2676_s10  ;;  %v692_v51 = vmul.f32 %v2401_v50, %v3011_v25 }
 0x7b2   :  { %v2403_v52 = vpop.eup %2402 }
 0x7b3   :  { %698 = vrot.lane.b32.xlu0 %v692_v51, %s2676_s10  ;;  %v876_v33 = vmul.f32 %v2403_v52, %v3054_v16 }
 0x7b4   :  { %v2405_v53 = vpop.eup %2404 }
 0x7b5   :  { %882 = vrot.lane.b32.xlu1 %v876_v33, %s2669_s0  ;;  %v877_v30 = vmul.f32 %v2405_v53, %v3058_v19 }
 0x7b6   :  { %v2407_v55 = vpop.eup %2406 }
 0x7b7   :  { %884 = vrot.lane.b32.xlu0 %v877_v30, %s2669_s0  ;;  %v878_v27 = vmul.f32 %v2407_v55, %v3052_v15 }
 0x7b8   :  { %v2409_v56 = vpop.eup %2408 }
 0x7b9   :  { %893 = vrot.lane.b32.xlu1 %v878_v27, %s2675_s5  ;;  %v879_v25 = vmul.f32 %v2409_v56, %v3056_v18 }
 0x7bb   :  { %895 = vrot.lane.b32.xlu0 %v879_v25, %s2675_s5 }
 0x800   :  { %v999_v16 = vpop.xlane.xlu0 %998 }
 0x805   :  { %v1002_v19 = vpop.xlane.xlu1 %1001 }
 0x80c   :  { %v1179_v39 = vpop.xlane.xlu0 %1178 }
 0x80e   :  { %v1182_v60 = vpop.xlane.xlu1 %1181 }
 0x810   :  { %v1185_v61 = vpop.xlane.xlu0 %1184 }
 0x812   :  { %v1188_v62 = vpop.xlane.xlu1 %1187 }
 0x814   :  { %v615_v15 = vpop.xlane.xlu0 %614 }
 0x815   :  { %2410 = vrcp.f32 %v615_v15  ;;  %v2303_v15 = vld [vmem:[#allocation9 + $0x28] ss:$16 sps:$4 sm:$0xff]  }
 0x816   :  { %v618_v63 = vpop.xlane.xlu1 %617 }
 0x817   :  { %2412 = vrcp.f32 %v618_v63  ;;  %v2308_v63 = vld [vmem:[#allocation9 + $0x44] ss:$16 sps:$4 sm:$0xff]  }
 0x818   :  { %v993_v4 = vpop.xlane.xlu0 %992  ;;  %2414 = vrcp.f32 %v999_v16  ;;  %v2296_v16 = vld [vmem:[#allocation9 + $0x4] ss:$16 sps:$4 sm:$0xff]  }
 0x819   :  { %2416 = vrcp.f32 %v993_v4  ;;  %1633 = vmatprep.subr.bf16.mxu0 %v2296_v16 }
 0x81a   :  { %v996_v18 = vpop.xlane.xlu1 %995  ;;  %2418 = vrcp.f32 %v1002_v19  ;;  %v2297_v19 = vld [vmem:[#allocation9 + $0x8] ss:$16 sps:$4 sm:$0xff]   ;;  %1634 = vmatpush1.bf16.msra.mxu0 %v2294_v59  ;;  %v2053_v59 = vld [vmem:[%s3202_s6] ss:$0 sm:$0xff]  ;;  %s2677_s6 = smov [#allocation15]  }
 0x81b   :  { %2420 = vrcp.f32 %v996_v18  ;;  %v2306_v18 = vld [vmem:[#allocation9 + $0x40] ss:$16 sps:$4 sm:$0xff]   ;;  %s1997_s16 = sshll.u32 %s2677_s6, 4  ;;  %s1998_s16 = int_to_ptr.vmem [resolvable:$true] %s1997_s16 }
 0x81c   :  { %2422 = vrcp.f32 %v1185_v61  ;;  %v2305_v61 = vld [vmem:[#allocation9 + $0x2c] ss:$16 sps:$4 sm:$0xff]   ;;  %s2628_s18 = scalar_lea.vmem %s1998_s16, 512  ;;  %p2633_p1 = scmp.lt.s32.totalorder %s1998_s16, %s1998_s16 }
 0x81d   :  { %2424 = vrcp.f32 %v1179_v39  ;;  %v2299_v39 = vld [vmem:[#allocation9 + $0xc] ss:$16 sps:$4 sm:$0xff]   ;;  %p2629_p0 = scmp.ne.s32.totalorder %s1998_s16, %s2628_s18  ;;  %p2634_p2 = scmp.lt.s32.totalorder %s2628_s18, %s2628_s18 }
 0x81e   :  { %2426 = vrcp.f32 %v1188_v62  ;;  %1686 = vmatprep.subr.bf16.mxu1 %v2299_v39  ;;  %v2300_v62 = vld [vmem:[#allocation9 + $0x20] ss:$16 sps:$4 sm:$0xff]  }
 0x81f   :  { %v2411_v0 = vpop.eup %2410  ;;  %2428 = vrcp.f32 %v1182_v60  ;;  %v2302_v60 = vld [vmem:[#allocation9 + $0x24] ss:$16 sps:$4 sm:$0xff]   ;;  %p2635_p3 = por %p2634_p2, %p2633_p1 }
 0x820   :  { %v690_v2 = vmul.f32 %v2411_v0, %v3013_v26  ;;  %1635 = vmatprep.subr.bf16.mxu0 %v2302_v60  ;;  %v2311_v0 = vld [vmem:[#allocation9 + $0x4c] ss:$16 sps:$4 sm:$0xff]  }
 0x821   :  { %v2413_v3 = vpop.eup %2412  ;;  %1636 = vmatpush1.bf16.msra.mxu0 %v2300_v62  ;;  %p2636_p4 = pnand %p2635_p3, %p2629_p0 }
 0x822   :  { %694 = vst.msk [vmem:[#allocation2] sm:$0xff] %vm369_vm1, %v690_v2  ;;  %v691_v7 = vmul.f32 %v2413_v3, %v3017_v28  ;;  %v2415_v8 = vpop.eup %2414  ;;  %1637 = vmatprep.subr.bf16.mxu0 %v2308_v63  ;;  %v2309_v2 = vld [vmem:[#allocation9 + $0x48] ss:$16 sps:$4 sm:$0xff]  }
 0x823   :  { %v701_v11 = vpop.permute.xlu1 %700  ;;  %v2417_v35 = vpop.eup %2416 }
 0x824   :  { %695 = vst.msk [vmem:[#allocation2 + $0x8] sm:$0xff] %vm369_vm1, %v691_v7  ;;  %v2419_v12 = vpop.eup %2418  ;;  %v2470_v7 = vld [vmem:[#allocation3] sm:$0xff] }
 0x825   :  { %706 = vst.msk [vmem:[#allocation2 + $0x8] sm:$0xff] %vm704_vm11, %v701_v11  ;;  %v699_v14 = vpop.permute.xlu0 %698  ;;  %v2421_v41 = vpop.eup %2420  ;;  %1638 = vmatpush1.bf16.msra.mxu0 %v2306_v18 }
 0x826   :  { %705 = vst.msk [vmem:[#allocation2] sm:$0xff] %vm704_vm11, %v699_v14  ;;  %v2423_v47 = vpop.eup %2422  ;;  %1639 = vmatprep.subr.bf16.mxu0 %v2314_v32  ;;  %v2355_v32 = vld [vmem:[#allocation11 + $0x30] sm:$0xff]  }
 0x827   :  { %v883_v20 = vpop.permute.xlu1 %882  ;;  %v2425_v58 = vpop.eup %2424 }
 0x828   :  { %889 = vst.msk [vmem:[#allocation2] sm:$0xff] %vm888_vm12, %v883_v20  ;;  %v2427_v49 = vpop.eup %2426 }
 0x829   :  { %v885_v26 = vpop.permute.xlu0 %884  ;;  %v2429_v34 = vpop.eup %2428 }
 0x82a   :  { %890 = vst.msk [vmem:[#allocation2 + $0x8] sm:$0xff] %vm888_vm12, %v885_v26  ;;  %v2471_v26 = vld [vmem:[#allocation3 + $0x18] sm:$0xff] }
 0x82b   :  { %v894_v21 = vpop.permute.xlu1 %893 }
 0x82c   :  { %900 = vst.msk [vmem:[#allocation2] sm:$0xff] %vm899_vm13, %v894_v21 }
 0x82d   :  { %v896_v28 = vpop.permute.xlu0 %895 }
 0x82e   :  { %901 = vst.msk [vmem:[#allocation2 + $0x8] sm:$0xff] %vm899_vm13, %v896_v28  ;;  %v2472_v28 = vld [vmem:[#allocation3 + $0x8] sm:$0xff] }
 0x833   :  { %v1277_v22 = vld [vmem:[#allocation2] sm:$0xff] }
 0x835   :  { %v1278_v23 = vld [vmem:[#allocation2 + $0x8] sm:$0xff] }
 0x836   :  { %v1281_v5 = vpack.c.bf16 %v1278_v23, %v1277_v22 }
 0x838   :  { %2236 = vmatprep.mubr.bf16.mxu1 %v1281_v5  ;;  %v2473_v5 = vld [vmem:[#allocation3 + $0x10] sm:$0xff] }
 0x84c   :  { %v2206_v10 = vpop.f32.mrb[8].mxu0 }
 0x84d   :  { %v1070_v9 = vmul.f32 %v2415_v8, %v2206_v10  ;;  %v1049_v36 = vpop.f32.mrb[9].mxu0 }
 0x84e   :  { %v1068_v37 = vmul.f32 %v2417_v35, %v1049_v36  ;;  %v2207_v38 = vpop.f32.mrb[10].mxu0  ;;  %v2317_v35 = vld [vmem:[#allocation9 + $0x6c] ss:$16 sps:$4 sm:$0xff]   ;;  %v2315_v36 = vld [vmem:[#allocation9 + $0x68] ss:$16 sps:$4 sm:$0xff]  }
 0x84f   :  { %v1071_v42 = vmul.f32 %v2419_v12, %v2207_v38  ;;  %v1052_v43 = vpop.f32.mrb[11].mxu0  ;;  %1076 = vrot.lane.b32.xlu1 %v1070_v9, %s2676_s10  ;;  %v2312_v9 = vld [vmem:[#allocation9 + $0x60] ss:$16 sps:$4 sm:$0xff]   ;;  %v2320_v12 = vld [vmem:[#allocation9 + $0x84] ss:$16 sps:$4 sm:$0xff]  }
 0x850   :  { %1072 = vst.msk [vmem:[#allocation2 + $0x10] sm:$0xff] %vm369_vm1, %v1068_v37  ;;  %v1069_v44 = vmul.f32 %v2421_v41, %v1052_v43  ;;  %1640 = vmatpush1.bf16.msra.mxu0 %v2312_v9  ;;  %v2323_v37 = vld [vmem:[#allocation9 + $0x8c] ss:$16 sps:$4 sm:$0xff]   ;;  %v2318_v38 = vld [vmem:[#allocation9 + $0x80] ss:$16 sps:$4 sm:$0xff]  }
 0x851   :  { %1078 = vrot.lane.b32.xlu0 %v1071_v42, %s2676_s10  ;;  %v2321_v41 = vld [vmem:[#allocation9 + $0x88] ss:$16 sps:$4 sm:$0xff]   ;;  %1641 = vmatprep.subr.bf16.mxu0 %v2320_v12  ;;  %v2324_v42 = vld [vmem:[#allocation9 + $0xa0] ss:$16 sps:$4 sm:$0xff]   ;;  %v2326_v43 = vld [vmem:[#allocation9 + $0xa4] ss:$16 sps:$4 sm:$0xff]  }
 0x852   :  { %1073 = vst.msk [vmem:[#allocation2 + $0x18] sm:$0xff] %vm369_vm1, %v1069_v44  ;;  %v2327_v44 = vld [vmem:[#allocation9 + $0xa8] ss:$16 sps:$4 sm:$0xff]  }
 0x853   :  { %v2357_v9 = vld [vmem:[#allocation11 + $0x38] sm:$0xff]  }
 0x854   :  { %1642 = vmatpush1.bf16.msra.mxu0 %v2318_v38 }
 0x855   :  { %1643 = vmatprep.subr.bf16.mxu0 %v2326_v43 }
 0x856   :  { %v2218_v40 = vpop.f32.mrb[12].mxu0 }
 0x857   :  { %v1255_v1 = vmul.f32 %v2423_v47, %v2218_v40  ;;  %v1234_v48 = vpop.f32.mrb[13].mxu0  ;;  %v2330_v47 = vld [vmem:[#allocation9 + $0xc0] ss:$16 sps:$4 sm:$0xff]   ;;  %v2333_v40 = vld [vmem:[#allocation9 + $0xc8] ss:$16 sps:$4 sm:$0xff]  }
 0x858   :  { %v1253_v29 = vmul.f32 %v2425_v58, %v1234_v48  ;;  %v2219_v13 = vpop.f32.mrb[14].mxu0  ;;  %1644 = vmatpush1.bf16.msra.mxu0 %v2324_v42  ;;  %v2338_v58 = vld [vmem:[#allocation9 + $0xe4] ss:$16 sps:$4 sm:$0xff]   ;;  %v2336_v48 = vld [vmem:[#allocation9 + $0xe0] ss:$16 sps:$4 sm:$0xff]  }
 0x859   :  { %v1256_v31 = vmul.f32 %v2427_v49, %v2219_v13  ;;  %v1237_v50 = vpop.f32.mrb[15].mxu0  ;;  %1645 = vmatprep.subr.bf16.mxu0 %v2332_v46  ;;  %v2339_v49 = vld [vmem:[#allocation9 + $0xe8] ss:$16 sps:$4 sm:$0xff]  }
 0x85a   :  { %v1254_v51 = vmul.f32 %v2429_v34, %v1237_v50  ;;  %1259 = vrot.lane.b32.xlu1 %v1253_v29, %s2669_s0 }
 0x85c   :  { %1261 = vrot.lane.b32.xlu0 %v1254_v51, %s2669_s0  ;;  %1646 = vmatpush1.bf16.msra.mxu0 %v2330_v47 }
 0x85d   :  { %1647 = vmatprep.subr.bf16.mxu0 %v2338_v58 }
 0x85e   :  { %1269 = vrot.lane.b32.xlu1 %v1255_v1, %s2675_s5  ;;  %v2341_v1 = vld [vmem:[#allocation9 + $0xec] ss:$16 sps:$4 sm:$0xff]  }
 0x860   :  { %1271 = vrot.lane.b32.xlu0 %v1256_v31, %s2675_s5  ;;  %1648 = vmatpush1.bf16.msra.mxu0 %v2336_v48 }
 0x8c1   :  { %v1077_v52 = vpop.permute.xlu1 %1076 }
 0x8c2   :  { %1082 = vst.msk [vmem:[#allocation2 + $0x10] sm:$0xff] %vm704_vm11, %v1077_v52 }
 0x8c3   :  { %v1079_v33 = vpop.permute.xlu0 %1078 }
 0x8c4   :  { %1083 = vst.msk [vmem:[#allocation2 + $0x18] sm:$0xff] %vm704_vm11, %v1079_v33 }
 0x8cc   :  { %v1260_v53 = vpop.permute.xlu1 %1259 }
 0x8cd   :  { %1265 = vst.msk [vmem:[#allocation2 + $0x10] sm:$0xff] %vm888_vm12, %v1260_v53 }
 0x8ce   :  { %v1262_v30 = vpop.permute.xlu0 %1261 }
 0x8cf   :  { %1266 = vst.msk [vmem:[#allocation2 + $0x18] sm:$0xff] %vm888_vm12, %v1262_v30 }
 0x8d0   :  { %v1270_v55 = vpop.permute.xlu1 %1269 }
 0x8d1   :  { %1275 = vst.msk [vmem:[#allocation2 + $0x10] sm:$0xff] %vm899_vm13, %v1270_v55 }
 0x8d2   :  { %v1272_v27 = vpop.permute.xlu0 %1271 }
 0x8d3   :  { %1276 = vst.msk [vmem:[#allocation2 + $0x18] sm:$0xff] %vm899_vm13, %v1272_v27 }
 0x8d8   :  { %v1279_v56 = vld [vmem:[#allocation2 + $0x10] sm:$0xff] }
 0x8da   :  { %v1280_v25 = vld [vmem:[#allocation2 + $0x18] sm:$0xff] }
 0x8db   :  { %v1282_v57 = vpack.c.bf16 %v1280_v25, %v1279_v56 }
 0x8dd   :  { %2237 = vmatmul.mubr.bf16.vlgmr.msra.gmra.mrb[24].mxu1 %v1282_v57 }
 0x8de   :  { %1718 = vmatprep.mubr.bf16.mxu1 %v2673_v17  ;;  %1687 = vmatpush1.bf16.msra.mxu1 %v2297_v19 }
 0x8df   :  { %1688 = vmatprep.subr.bf16.mxu1 %v2305_v61 }
 0x8e2   :  { %1689 = vmatpush1.bf16.msra.mxu1 %v2303_v15 }
 0x8e3   :  { %1690 = vmatprep.subr.bf16.mxu1 %v2311_v0 }
 0x8e6   :  { %1691 = vmatpush1.bf16.msra.mxu1 %v2309_v2 }
 0x8e7   :  { %1692 = vmatprep.subr.bf16.mxu1 %v2317_v35  ;;  %v2356_v35 = vld [vmem:[#allocation11 + $0x78] sm:$0xff]  }
 0x8ea   :  { %1693 = vmatpush1.bf16.msra.mxu1 %v2315_v36 }
 0x8eb   :  { %1694 = vmatprep.subr.bf16.mxu1 %v2323_v37 }
 0x8ee   :  { %1695 = vmatpush1.bf16.msra.mxu1 %v2321_v41 }
 0x8ef   :  { %1696 = vmatprep.subr.bf16.mxu1 %v2329_v45 }
 0x8f2   :  { %1697 = vmatpush1.bf16.msra.mxu1 %v2327_v44 }
 0x8f3   :  { %1698 = vmatprep.subr.bf16.mxu1 %v2335_v54 }
 0x8f6   :  { %1699 = vmatpush1.bf16.msra.mxu1 %v2333_v40 }
 0x8f7   :  { %1700 = vmatprep.subr.bf16.mxu1 %v2341_v1 }
 0x8fa   :  { %1701 = vmatpush1.bf16.msra.mxu1 %v2339_v49 }
 0x9b0   :  { %v2238_v3 = vpop.f32.mrb[24].mxu1 }
 0x9b1   :  { %v1381_v4 = vpop.f32.mrb[25].mxu1  ;;  %v3160_v6 = vadd.f32 %v2473_v5, %v2238_v3  ;;  %v2342_v3 = vld [vmem:[#allocation11 + $0x40] sm:$0xff]  }
 0x9b2   :  { %v3152_v11 = vadd.f32 %v2470_v7, %v1381_v4  ;;  %v2239_v14 = vpop.f32.mrb[26].mxu1  ;;  %v2343_v4 = vld [vmem:[#allocation11] sm:$0xff]   ;;  %2144 = vmatprep.subr.bf16.mxu0 %v2342_v3  ;;  %v2344_v7 = vld [vmem:[#allocation11 + $0x48] sm:$0xff]  }
 0x9b3   :  { %v1384_v20 = vpop.f32.mrb[27].mxu1  ;;  %v3154_v21 = vadd.f32 %v2471_v26, %v2239_v14  ;;  %v1402_v10 = vmul.f32 %v3160_v6, %v3160_v6  ;;  %v2345_v14 = vld [vmem:[#allocation11 + $0x8] sm:$0xff]   ;;  %v2347_v26 = vld [vmem:[#allocation11 + $0x10] sm:$0xff]   ;;  %v2351_v5 = vld [vmem:[#allocation11 + $0x20] sm:$0xff]  }
 0x9b4   :  { %v3156_v22 = vadd.f32 %v2472_v28, %v1384_v20  ;;  %v1400_v23 = vmul.f32 %v3152_v11, %v3152_v11  ;;  %v2346_v20 = vld [vmem:[#allocation11 + $0x50] sm:$0xff]   ;;  %v2348_v28 = vld [vmem:[#allocation11 + $0x58] sm:$0xff]  }
 0x9b5   :  { %v1403_v8 = vmul.f32 %v3154_v21, %v3154_v21 }
 0x9b6   :  { %1404 = vadd.xlane.f32.xlu1 %v1400_v23  ;;  %v1401_v24 = vmul.f32 %v3156_v22, %v3156_v22  ;;  %v2349_v23 = vld [vmem:[#allocation11 + $0x18] sm:$0xff]  }
 0x9b8   :  { %1406 = vadd.xlane.f32.xlu0 %v1401_v24  ;;  %v2352_v24 = vld [vmem:[#allocation11 + $0x68] sm:$0xff]  }
 0x9ba   :  { %1410 = vadd.xlane.f32.xlu1 %v1403_v8  ;;  %v2353_v8 = vld [vmem:[#allocation11 + $0x28] sm:$0xff]  }
 0x9bc   :  { %1408 = vadd.xlane.f32.xlu0 %v1402_v10  ;;  %v2354_v10 = vld [vmem:[#allocation11 + $0x70] sm:$0xff]  }
 0xa43   :  { %v1405_v29 = vpop.xlane.xlu1 %1404 }
 0xa44   :  { %v1412_v13 = vmul.f32 0.0078125, %v1405_v29 }
 0xa45   :  { %v1407_v34 = vpop.xlane.xlu0 %1406 }
 0xa46   :  { %v1416_v31 = vadd.f32 1e-06, %v1412_v13  ;;  %v1413_v50 = vmul.f32 0.0078125, %v1407_v34 }
 0xa47   :  { %v1411_v51 = vpop.xlane.xlu1 %1410 }
 0xa48   :  { %2430 = vrsqrt.f32 %v1416_v31  ;;  %v1417_v52 = vadd.f32 1e-06, %v1413_v50  ;;  %v1415_v33 = vmul.f32 0.0078125, %v1411_v51 }
 0xa49   :  { %v1409_v53 = vpop.xlane.xlu0 %1408 }
 0xa4a   :  { %2432 = vrsqrt.f32 %v1417_v52  ;;  %v1419_v30 = vadd.f32 1e-06, %v1415_v33  ;;  %v1414_v55 = vmul.f32 0.0078125, %v1409_v53 }
 0xa4c   :  { %v1418_v27 = vadd.f32 1e-06, %v1414_v55  ;;  %2434 = vrsqrt.f32 %v1419_v30 }
 0xa4e   :  { %2436 = vrsqrt.f32 %v1418_v27 }
 0xa52   :  { %v2431_v56 = vpop.eup %2430 }
 0xa53   :  { %v1424_v25 = vmul.f32 %v2431_v56, %v3152_v11 }
 0xa54   :  { %v2433_v57 = vpop.eup %2432 }
 0xa55   :  { %v1425_v16 = vmul.f32 %v2433_v57, %v3156_v22  ;;  %v1435_v39 = vmul.f32 %v2053_v59, %v1424_v25 }
 0xa56   :  { %v2435_v19 = vpop.eup %2434 }
 0xa57   :  { %v1436_v60 = vmul.f32 %v2053_v59, %v1425_v16  ;;  %v1427_v63 = vmul.f32 %v2435_v19, %v3154_v21 }
 0xa58   :  { %v2437_v61 = vpop.eup %2436 }
 0xa59   :  { %v1439_v62 = vpack.c.bf16 %v1436_v60, %v1435_v39  ;;  %v1426_v15 = vmul.f32 %v2437_v61, %v3160_v6  ;;  %v1438_v18 = vmul.f32 %v2053_v59, %v1427_v63 }
 0xa5b   :  { %1666 = vmatmul.mubr.bf16.vlgmr.msra.gmra.mrb[16].mxu0 %v1439_v62  ;;  %1719 = vmatmul.mubr.bf16.vlgmr.msra.gmra.mrb[28].mxu1 %v1439_v62  ;;  %v1437_v0 = vmul.f32 %v2053_v59, %v1426_v15 }
 0xa5c   :  { %1675 = vmatprep.mubr.bf16.mxu0 %v2673_v17  ;;  %1728 = vmatprep.mubr.bf16.mxu1 %v2673_v17  ;;  %v2350_v17 = vld [vmem:[#allocation11 + $0x60] sm:$0xff]  }
 0xa5d   :  { %v1440_v2 = vpack.c.bf16 %v1438_v18, %v1437_v0  ;;  %2145 = vmatpush3.bf16.msra.mxu0 %v2343_v4 }
 0xa5e   :  { %2146 = vmatprep.subr.bf16.mxu0 %v2344_v7 }
 0xa61   :  { %2147 = vmatpush3.bf16.msra.mxu0 %v2345_v14 }
 0xa62   :  { %2148 = vmatprep.subr.bf16.mxu0 %v2346_v20 }
 0xa63   :  { %1676 = vmatmul.mubr.bf16.gmra.mrb[20].mxu0 %v1440_v2  ;;  %1729 = vmatmul.mubr.bf16.gmra.mrb[32].mxu1 %v1440_v2 }
 0xa65   :  { %2149 = vmatpush3.bf16.msra.mxu0 %v2347_v26 }
 0xa66   :  { %2150 = vmatprep.subr.bf16.mxu0 %v2348_v28 }
 0xa69   :  { %2151 = vmatpush3.bf16.msra.mxu0 %v2349_v23 }
 0xa6a   :  { %2152 = vmatprep.subr.bf16.mxu0 %v2350_v17 }
 0xa6d   :  { %2153 = vmatpush3.bf16.msra.mxu0 %v2351_v5 }
 0xa6e   :  { %2154 = vmatprep.subr.bf16.mxu0 %v2352_v24 }
 0xa71   :  { %2155 = vmatpush3.bf16.msra.mxu0 %v2353_v8 }
 0xa72   :  { %2156 = vmatprep.subr.bf16.mxu0 %v2354_v10 }
 0xa75   :  { %2157 = vmatpush3.bf16.msra.mxu0 %v2355_v32 }
 0xa76   :  { %2158 = vmatprep.subr.bf16.mxu0 %v2356_v35 }
 0xa79   :  { %2159 = vmatpush3.bf16.msra.mxu0 %v2357_v9 }
 0xb2e   :  { %v1667_v36 = vpop.f32.mrb[16].mxu0  ;;  %v1720_v12 = vpop.f32.mrb[28].mxu1 }
 0xb2f   :  { %v2086_v37 = vmul.f32 -1.442695, %v1667_v36  ;;  %v1669_v38 = vpop.f32.mrb[17].mxu0  ;;  %v1722_v41 = vpop.f32.mrb[29].mxu1 }
 0xb30   :  { %v2087_v42 = vmul.f32 -1.442695, %v1669_v38  ;;  %v1671_v43 = vpop.f32.mrb[18].mxu0  ;;  %v1724_v44 = vpop.f32.mrb[30].mxu1 }
 0xb31   :  { %2438 = vpow2.f32 %v2086_v37  ;;  %v2088_v45 = vmul.f32 -1.442695, %v1671_v43  ;;  %v1673_v46 = vpop.f32.mrb[19].mxu0  ;;  %v1726_v54 = vpop.f32.mrb[31].mxu1 }
 0xb32   :  { %2440 = vpow2.f32 %v2087_v42  ;;  %v2089_v47 = vmul.f32 -1.442695, %v1673_v46 }
 0xb33   :  { %2442 = vpow2.f32 %v2088_v45 }
 0xb34   :  { %2444 = vpow2.f32 %v2089_v47 }
 0xb36   :  { %v1677_v40 = vpop.f32.mrb[20].mxu0  ;;  %v1730_v58 = vpop.f32.mrb[32].mxu1 }
 0xb37   :  { %v2090_v1 = vmul.f32 -1.442695, %v1677_v40  ;;  %v1679_v48 = vpop.f32.mrb[21].mxu0  ;;  %v1732_v49 = vpop.f32.mrb[33].mxu1 }
 0xb38   :  { %v2091_v29 = vmul.f32 -1.442695, %v1679_v48  ;;  %v1681_v13 = vpop.f32.mrb[22].mxu0  ;;  %v1734_v34 = vpop.f32.mrb[34].mxu1 }
 0xb39   :  { %2446 = vpow2.f32 %v2090_v1  ;;  %v2092_v31 = vmul.f32 -1.442695, %v1681_v13  ;;  %v1683_v50 = vpop.f32.mrb[23].mxu0  ;;  %v1736_v51 = vpop.f32.mrb[35].mxu1 }
 0xb3a   :  { %2448 = vpow2.f32 %v2091_v29  ;;  %v2093_v52 = vmul.f32 -1.442695, %v1683_v50 }
 0xb3b   :  { %v2439_v33 = vpop.eup %2438  ;;  %2450 = vpow2.f32 %v2092_v31 }
 0xb3c   :  { %v2441_v53 = vpop.eup %2440  ;;  %v1763_v30 = vadd.f32 1.0, %v2439_v33  ;;  %2452 = vpow2.f32 %v2093_v52 }
 0xb3d   :  { %v2443_v55 = vpop.eup %2442  ;;  %v1764_v27 = vadd.f32 1.0, %v2441_v53 }
 0xb3e   :  { %v2445_v56 = vpop.eup %2444  ;;  %2454 = vrcp.f32 %v1763_v30  ;;  %v1765_v25 = vadd.f32 1.0, %v2443_v55 }
 0xb3f   :  { %2456 = vrcp.f32 %v1764_v27  ;;  %v1766_v57 = vadd.f32 1.0, %v2445_v56 }
 0xb40   :  { %2458 = vrcp.f32 %v1765_v25 }
 0xb41   :  { %2460 = vrcp.f32 %v1766_v57 }
 0xb43   :  { %v2447_v59 = vpop.eup %2446 }
 0xb44   :  { %v2449_v16 = vpop.eup %2448  ;;  %v1767_v19 = vadd.f32 1.0, %v2447_v59 }
 0xb45   :  { %v2451_v39 = vpop.eup %2450  ;;  %v1768_v60 = vadd.f32 1.0, %v2449_v16 }
 0xb46   :  { %v2453_v61 = vpop.eup %2452  ;;  %2462 = vrcp.f32 %v1767_v19  ;;  %v1769_v62 = vadd.f32 1.0, %v2451_v39 }
 0xb47   :  { %2464 = vrcp.f32 %v1768_v60  ;;  %v1770_v15 = vadd.f32 1.0, %v2453_v61 }
 0xb48   :  { %v2455_v63 = vpop.eup %2454  ;;  %2466 = vrcp.f32 %v1769_v62 }
 0xb49   :  { %v2457_v0 = vpop.eup %2456  ;;  %v1787_v18 = vmul.f32 %v2455_v63, %v1667_v36  ;;  %2468 = vrcp.f32 %v1770_v15 }
 0xb4a   :  { %v2459_v2 = vpop.eup %2458  ;;  %v1788_v3 = vmul.f32 %v2457_v0, %v1669_v38 }
 0xb4b   :  { %v2461_v4 = vpop.eup %2460  ;;  %v1795_v7 = vmul.f32 %v1787_v18, %v1720_v12  ;;  %v1789_v14 = vmul.f32 %v2459_v2, %v1671_v43 }
 0xb4c   :  { %v1796_v20 = vmul.f32 %v1788_v3, %v1722_v41  ;;  %v1790_v26 = vmul.f32 %v2461_v4, %v1673_v46 }
 0xb4d   :  { %v1797_v28 = vmul.f32 %v1789_v14, %v1724_v44 }
 0xb4e   :  { %v1798_v23 = vmul.f32 %v1790_v26, %v1726_v54 }
 0xb4f   :  { %v1803_v17 = vpack.c.bf16 %v1797_v28, %v1795_v7 }
 0xb50   :  { %v2463_v5 = vpop.eup %2462  ;;  %v1804_v24 = vpack.c.bf16 %v1798_v23, %v1796_v20 }
 0xb51   :  { %v2465_v8 = vpop.eup %2464  ;;  %v1791_v10 = vmul.f32 %v2463_v5, %v1677_v40 }
 0xb52   :  { %v2467_v32 = vpop.eup %2466  ;;  %v1792_v35 = vmul.f32 %v2465_v8, %v1679_v48  ;;  %1967 = vmatprep.mubr.bf16.mxu0 %v1804_v24 }
 0xb53   :  { %v2469_v9 = vpop.eup %2468  ;;  %v1799_v36 = vmul.f32 %v1791_v10, %v1730_v58  ;;  %v1793_v37 = vmul.f32 %v2467_v32, %v1681_v13  ;;  %1968 = vmatmul.mubr.bf16.vlgmr.msra.gmra.mrb[24].mxu0 %v1803_v17 }
 0xb54   :  { %v1800_v38 = vmul.f32 %v1792_v35, %v1732_v49  ;;  %v1794_v42 = vmul.f32 %v2469_v9, %v1683_v50 }
 0xb55   :  { %v1801_v12 = vmul.f32 %v1793_v37, %v1734_v34 }
 0xb56   :  { %v1802_v43 = vmul.f32 %v1794_v42, %v1736_v51 }
 0xb57   :  { %v1805_v41 = vpack.c.bf16 %v1801_v12, %v1799_v36 }
 0xb58   :  { %v1806_v45 = vpack.c.bf16 %v1802_v43, %v1800_v38 }
 0xb5a   :  { %1975 = vmatprep.mubr.bf16.mxu0 %v1806_v45 }
 0xb5b   :  { %1976 = vmatmul.mubr.bf16.gmra.mrb[28].mxu0 %v1805_v41 }
 0xc26   :  { %v2160_v44 = vpop.f32.mrb[24].mxu0 }
 0xc27   :  { %v2161_v46 = vpop.f32.mrb[25].mxu0 }
 0xc28   :  { %v2162_v54 = vadd.f32 %v2161_v46, %v2160_v44  ;;  %v2163_v47 = vpop.f32.mrb[26].mxu0 }
 0xc29   :  { %v2164_v40 = vpop.f32.mrb[27].mxu0 }
 0xc2a   :  { %v1984_v1 = vadd.f32 %v2162_v54, %v3152_v11  ;;  %v2165_v48 = vadd.f32 %v2164_v40, %v2163_v47 }
 0xc2c   :  { %1988 = vst [vmem:[#allocation15] sm:$0xff] %v1984_v1  ;;  %v1985_v58 = vadd.f32 %v2165_v48, %v3156_v22 }
 0xc2e   :  { %1989 = vst [vmem:[#allocation15 + $0x8] sm:$0xff] %v1985_v58  ;;  %v2166_v49 = vpop.f32.mrb[28].mxu0 }
 0xc2f   :  { %v2167_v29 = vpop.f32.mrb[29].mxu0 }
 0xc30   :  { %v2168_v13 = vadd.f32 %v2167_v29, %v2166_v49  ;;  %v2169_v34 = vpop.f32.mrb[30].mxu0 }
 0xc31   :  { %v2170_v31 = vpop.f32.mrb[31].mxu0 }
 0xc32   :  { %v1986_v50 = vadd.f32 %v2168_v13, %v3160_v6  ;;  %v2171_v51 = vadd.f32 %v2170_v31, %v2169_v34 }
 0xc34   :  { %1990 = vst [vmem:[#allocation15 + $0x10] sm:$0xff] %v1986_v50  ;;  %v1987_v52 = vadd.f32 %v2171_v51, %v3154_v21 }
 0xc36   :  { %1991 = vst [vmem:[#allocation15 + $0x18] sm:$0xff] %v1987_v52 }
 0xc37   :  { %2639 = shalt.err (!%p2636_p4)
}
 0xc38   :  { %s2640_s20 = scalar_lea.hbm %s3205_s9, 512 }
 0xc39   :  { %p2641_p5 = scmp.ne.s32.totalorder %s3205_s9, %s2640_s20  ;;  %p2644_p6 = scmp.lt.u32.totalorder %s2640_s20, %s3205_s9 }
 0xc3b   :  { %p2646_p7 = pnand %p2644_p6, %p2641_p5 }
 0xc3d   :  { %2649 = shalt.err (!%p2646_p7)
}
 0xc3e   :  { %2003 = dma.vmem_to_hbm [thread:$0]  %s1998_s16, 512, %s3205_s9, [#allocation5], %s2662_s21, %s2662_s21, %s2663_s22  }
 0xc3f   :  { %2658 = dma.done.wait [#allocation5], 512  }
 0xc40   :  { %2659 = vsyncadd [#allocation5], 4294966784 }
 0xc41   :  { %2007 = vsyncpa [#allocation4], 1 }
 0xc42   :  { %2008 = vsyncpa [#allocation7], 1 }
 0xc43   :  { %2009 = vsyncpa [#allocation10], 1 }
 0xc44   :  { %2010 = vsyncpa [#allocation13], 1 }
 0xc45   :  { %2011 = vsyncpa [#allocation5], 1 }

</bundles_post_ra>
